<compile_context>
chip_gen: v6e
topology: v6e:2x2x1
jax: 0.10.0
libtpu: 0.0.40
codegen_flags: <defaults>
</compile_context>

<pallas_src>
import functools
import math

import jax
import jax.numpy as jnp
from jax import lax
from jax.experimental import pallas as pl
from jax.experimental.pallas import tpu as pltpu


_MASK_VALUE = -1e30  # finite "−inf": avoids exp(-inf - -inf) = NaN on masked rows


def _swa_kernel(xq_ref, xk_ref, wq_ref, wk_ref, wv_ref, wo_ref,
                bq_ref, bk_ref, bv_ref, bo_ref,
                o_ref,
                q_scr, acc_scr, m_scr, l_scr,
                *, num_heads, head_dim, tq, tk, nk, kv_lo_block, n_band,
                win_lo, win_hi):
    H, Dh = num_heads, head_dim
    qi = pl.program_id(1)
    kj = pl.program_id(2)
    kb = qi + kv_lo_block + kj                         # unclamped key-tile index
    valid = jnp.logical_and(kb >= 0, kb < nk)

    cdt = xq_ref.dtype                                 # MXU operand dtype

    @pl.when(kj == 0)
    def _init():
        # Full-width Q projection for this query tile (scale folded into Wq/bq on host).
        xq = xq_ref[0]                                                          # (tq, D)
        q = jnp.dot(xq, wq_ref[...], preferred_element_type=jnp.float32) + bq_ref[...]
        q_scr[...] = q.astype(q_scr.dtype)
        acc_scr[...] = jnp.zeros_like(acc_scr)
        m_scr[...] = jnp.full(m_scr.shape, _MASK_VALUE, m_scr.dtype)
        l_scr[...] = jnp.zeros_like(l_scr)

    @pl.when(valid)
    def _accumulate():
        xk = xk_ref[0]                                                          # (tk, D)
        # Full-width K / V projections for this key tile (D-wide MXU matmuls).
        k = jnp.dot(xk, wk_ref[...], preferred_element_type=jnp.float32) + bk_ref[...]
        v = jnp.dot(xk, wv_ref[...], preferred_element_type=jnp.float32) + bv_ref[...]
        k = k.astype(cdt)
        v = v.astype(cdt)

        # Band mask for this (query tile, key tile) pair only: (tq, tk).
        r = lax.broadcasted_iota(jnp.int32, (tq, tk), 0) + qi * tq              # rows i
        c = lax.broadcasted_iota(jnp.int32, (tq, tk), 1) + kb * tk              # cols j
        diff = c - r
        inband = jnp.logical_and(diff >= win_lo, diff <= win_hi)

        for h in range(H):                                # static unroll over heads
            sl = slice(h * Dh, (h + 1) * Dh)
            q_h = q_scr[:, sl]                                                   # (tq, Dh)
            # q . k^T without materializing a transpose.
            s = jnp.einsum("qd,kd->qk", q_h, k[:, sl],
                           preferred_element_type=jnp.float32)                   # (tq, tk)
            s = jnp.where(inband, s, _MASK_VALUE)

            m_prev = m_scr[h]                                                    # (tq, 1)
            m_new = jnp.maximum(m_prev, jnp.max(s, axis=-1, keepdims=True))
            alpha = jnp.exp(m_prev - m_new)
            p = jnp.exp(s - m_new)
            l_scr[h] = alpha * l_scr[h] + jnp.sum(p, axis=-1, keepdims=True)
            acc_scr[:, sl] = alpha * acc_scr[:, sl] + jnp.dot(
                p.astype(cdt), v[:, sl], preferred_element_type=jnp.float32)
            m_scr[h] = m_new
        # TODO(synk): dropout on attention probs omitted (eval/inference semantics).

    @pl.when(kj == n_band - 1)
    def _finalize():
        # Normalize each head in place; heads already live in lane slots (no concat).
        for h in range(H):
            sl = slice(h * Dh, (h + 1) * Dh)
            l_h = l_scr[h]
            inv = pl.reciprocal(l_h, approx=True)          # EUP seed
            inv = inv * (2.0 - l_h * inv)                  # one Newton step -> f32 accuracy
            acc_scr[:, sl] = acc_scr[:, sl] * inv
        y = acc_scr[...].astype(cdt)                                             # (tq, D)
        o = jnp.dot(y, wo_ref[...], preferred_element_type=jnp.float32) + bo_ref[...]
        o_ref[0] = o.astype(o_ref.dtype)


def _pick_tile(S):
    for t in (256, 128, 64, 32, 16, 8):
        if t <= S and S % t == 0:
            return t
    return S  # fall back to the full sequence (full-dim block is always legal)


def sliding_window_attention(x, params, *, num_heads, window_size):
    """x: (B, S, D). params: wq,wk,wv,wo:(D,D) and bq,bk,bv,bo:(D,) (nn.Linear layout)."""
    B, S, D = x.shape
    assert D % num_heads == 0
    Dh = D // num_heads

    # torch: triu(-window_size // 2).tril(window_size // 2)  ==>  win_lo <= j-i <= win_hi
    win_hi = window_size // 2
    win_lo = (-window_size) // 2

    tq = tk = _pick_tile(S)
    nq = S // tq
    nk = S // tk
    kv_lo_block = win_lo // tk                               # floor division, <= 0
    n_band = (tq - 1 + win_hi) // tk - kv_lo_block + 1       # key tiles per query tile

    cdt = x.dtype
    scale = 1.0 / math.sqrt(Dh)
    # Pre-transpose weights (y = x @ W.T -> x @ WT) and fold softmax scale into Q.
    wqT = (params["wq"].T * scale).astype(cdt)
    wkT = params["wk"].T.astype(cdt)
    wvT = params["wv"].T.astype(cdt)
    woT = params["wo"].T.astype(cdt)
    bq = (params["bq"] * scale).reshape(1, D).astype(jnp.float32)
    bk = params["bk"].reshape(1, D).astype(jnp.float32)
    bv = params["bv"].reshape(1, D).astype(jnp.float32)
    bo = params["bo"].reshape(1, D).astype(jnp.float32)

    kern = functools.partial(
        _swa_kernel, num_heads=num_heads, head_dim=Dh, tq=tq, tk=tk, nk=nk,
        kv_lo_block=kv_lo_block, n_band=n_band, win_lo=win_lo, win_hi=win_hi)

    def kv_index(b, qi, kj):
        kb = qi + kv_lo_block + kj
        return (b, jnp.clip(kb, 0, nk - 1), 0)               # clamped; in-kernel skip if OOB

    w_spec = pl.BlockSpec((D, D), lambda b, qi, kj: (0, 0))
    b_spec = pl.BlockSpec((1, D), lambda b, qi, kj: (0, 0))

    # Advisory cost hint for XLA's scheduler.
    itemsize = jnp.dtype(cdt).itemsize
    visits = B * nq * min(n_band, nk)
    flops = int(2 * B * S * D * D                 # Q projection
                + visits * 4 * tk * D * D         # K + V projections
                + visits * 4 * tq * tk * D        # scores + P.V
                + 2 * B * S * D * D)              # output projection
    bytes_acc = int((2 * B * S * D + visits * tk * D) * itemsize
                    + 4 * D * D * itemsize + 4 * D * 4)
    cost = pl.CostEstimate(flops=flops,
                           transcendentals=int(visits * num_heads * tq * tk),
                           bytes_accessed=bytes_acc)

    return pl.pallas_call(
        kern,
        out_shape=jax.ShapeDtypeStruct((B, S, D), x.dtype),
        grid_spec=pltpu.PrefetchScalarGridSpec(
            num_scalar_prefetch=0,
            grid=(B, nq, n_band),
            in_specs=[
                pl.BlockSpec((1, tq, D), lambda b, qi, kj: (b, qi, 0)),  # x (query tile)
                pl.BlockSpec((1, tk, D), kv_index),                      # x (banded key tile)
                w_spec, w_spec, w_spec, w_spec,                          # WqT WkT WvT WoT
                b_spec, b_spec, b_spec, b_spec,                          # bq bk bv bo
            ],
            out_specs=pl.BlockSpec((1, tq, D), lambda b, qi, kj: (b, qi, 0)),
            scratch_shapes=[
                pltpu.VMEM((tq, D), cdt),                       # q (scaled, fused heads)
                pltpu.VMEM((tq, D), jnp.float32),               # output accumulator
                pltpu.VMEM((num_heads, tq, 1), jnp.float32),    # running max
                pltpu.VMEM((num_heads, tq, 1), jnp.float32),    # running denom
            ],
        ),
        compiler_params=pltpu.CompilerParams(
            dimension_semantics=("parallel", "parallel", "arbitrary"),
            vmem_limit_bytes=32 * 1024 * 1024,
        ),
        cost_estimate=cost,
    )(x, x, wqT, wkT, wvT, woT, bq, bk, bv, bo)


def _reference(x, params, *, num_heads, window_size):
    """Pure-JAX reference mirroring the PyTorch forward (eval mode)."""
    B, S, D = x.shape
    Dh = D // num_heads

    def proj(w, b):
        y = jnp.einsum("bsd,ed->bse", x, w) + b
        return y.reshape(B, S, num_heads, Dh).transpose(0, 2, 1, 3)  # (B, H, S, Dh)

    q = proj(params["wq"], params["bq"])
    k = proj(params["wk"], params["bk"])
    v = proj(params["wv"], params["bv"])

    lo = (-window_size) // 2
    hi = window_size // 2
    i = jnp.arange(S)[:, None]
    j = jnp.arange(S)[None, :]
    allowed = (j - i >= lo) & (j - i <= hi)

    scores = jnp.einsum("bhqd,bhkd->bhqk", q, k) / math.sqrt(Dh)
    scores = jnp.where(allowed[None, None], scores, -jnp.inf)
    probs = jax.nn.softmax(scores, axis=-1)
    out = jnp.einsum("bhqk,bhkd->bhqd", probs, v)
    out = out.transpose(0, 2, 1, 3).reshape(B, S, D)
    return jnp.einsum("bsd,ed->bse", out, params["wo"]) + params["bo"]


def _init_params(key, d_model):
    """Deterministic nn.Linear-style init: U(-1/sqrt(in), 1/sqrt(in))."""
    bound = 1.0 / math.sqrt(d_model)
    names = ["wq", "bq", "wk", "bk", "wv", "bv", "wo", "bo"]
    keys = jax.random.split(key, len(names))
    params = {}
    for n, k in zip(names, keys):
        shape = (d_model, d_model) if n.startswith("w") else (d_model,)
        params[n] = jax.random.uniform(k, shape, jnp.float32, -bound, bound)
    return params


if __name__ == "__main__":
    B, S, D = 2, 8, 32
    num_heads = 4
    window_size = 4

    key = jax.random.PRNGKey(0)
    kx, kp = jax.random.split(key)
    x = jax.random.normal(kx, (B, S, D), dtype=jnp.float32)
    params = _init_params(kp, D)

    out = sliding_window_attention(x, params, num_heads=num_heads,
                                   window_size=window_size)
    out = jax.block_until_ready(out)

    ref = _reference(x, params, num_heads=num_heads, window_size=window_size)
    assert out.shape == (B, S, D)
    err = float(jnp.max(jnp.abs(out - ref)))
    assert err < 1e-3, f"mismatch vs reference: {err}"
    print("KERNEL_OK")
</pallas_src>

<mosaic_0001>
module attributes {stable_mosaic.version = 11 : i64} {
  func.func @_swa_kernel(%arg0: i32, %arg1: i32, %arg2: i32, %arg3: memref<1x8x32xf32, #tpu.memory_space<vmem>>, %arg4: memref<1x8x32xf32, #tpu.memory_space<vmem>>, %arg5: memref<32x32xf32, #tpu.memory_space<vmem>>, %arg6: memref<32x32xf32, #tpu.memory_space<vmem>>, %arg7: memref<32x32xf32, #tpu.memory_space<vmem>>, %arg8: memref<32x32xf32, #tpu.memory_space<vmem>>, %arg9: memref<1x32xf32, #tpu.memory_space<vmem>>, %arg10: memref<1x32xf32, #tpu.memory_space<vmem>>, %arg11: memref<1x32xf32, #tpu.memory_space<vmem>>, %arg12: memref<1x32xf32, #tpu.memory_space<vmem>>, %arg13: memref<1x8x32xf32, #tpu.memory_space<vmem>>, %arg14: memref<8x32xf32, #tpu.memory_space<vmem>>, %arg15: memref<8x32xf32, #tpu.memory_space<vmem>>, %arg16: memref<4x8x1xf32, #tpu.memory_space<vmem>>, %arg17: memref<4x8x1xf32, #tpu.memory_space<vmem>>) attributes {dimension_semantics = [#tpu.dimension_semantics<parallel>, #tpu.dimension_semantics<parallel>, #tpu.dimension_semantics<arbitrary>], iteration_bounds = array<i64: 2, 1, 3>, scalar_prefetch = 0 : i64, scratch_operands = 4 : i64, tpu.core_type = #tpu.core_type<tc>, window_params = [{transform_indices = @transform_0, window_bounds = array<i64: 1, 8, 32>}, {transform_indices = @transform_1, window_bounds = array<i64: 1, 8, 32>}, {pipeline_mode = #tpu.pipeline_mode<synchronous>, transform_indices = @transform_2, window_bounds = array<i64: 32, 32>}, {pipeline_mode = #tpu.pipeline_mode<synchronous>, transform_indices = @transform_3, window_bounds = array<i64: 32, 32>}, {pipeline_mode = #tpu.pipeline_mode<synchronous>, transform_indices = @transform_4, window_bounds = array<i64: 32, 32>}, {pipeline_mode = #tpu.pipeline_mode<synchronous>, transform_indices = @transform_5, window_bounds = array<i64: 32, 32>}, {pipeline_mode = #tpu.pipeline_mode<synchronous>, transform_indices = @transform_6, window_bounds = array<i64: 1, 32>}, {pipeline_mode = #tpu.pipeline_mode<synchronous>, transform_indices = @transform_7, window_bounds = array<i64: 1, 32>}, {pipeline_mode = #tpu.pipeline_mode<synchronous>, transform_indices = @transform_8, window_bounds = array<i64: 1, 32>}, {pipeline_mode = #tpu.pipeline_mode<synchronous>, transform_indices = @transform_9, window_bounds = array<i64: 1, 32>}, {transform_indices = @transform_10, window_bounds = array<i64: 1, 8, 32>}]} {
    %c-1_i32 = arith.constant -1 : i32
    %0 = arith.addi %arg1, %c-1_i32 : i32
    %1 = arith.addi %0, %arg2 : i32
    %c0_i32 = arith.constant 0 : i32
    %2 = arith.cmpi sge, %1, %c0_i32 : i32
    %c1_i32 = arith.constant 1 : i32
    %3 = arith.cmpi slt, %1, %c1_i32 : i32
    %4 = arith.andi %2, %3 : i1
    %c0_i32_0 = arith.constant 0 : i32
    %5 = arith.cmpi eq, %arg2, %c0_i32_0 : i32
    %6 = arith.extui %5 : i1 to i32
    %c0_i32_1 = arith.constant 0 : i32
    %7 = arith.cmpi ne, %6, %c0_i32_1 : i32
    scf.if %7 {
      %c0 = arith.constant 0 : index
      %c0_4 = arith.constant 0 : index
      %c0_5 = arith.constant 0 : index
      %13 = vector.load %arg3[%c0, %c0_4, %c0_5] : memref<1x8x32xf32, #tpu.memory_space<vmem>>, vector<1x8x32xf32>
      %14 = vector.shape_cast %13 : vector<1x8x32xf32> to vector<8x32xf32>
      %c0_6 = arith.constant 0 : index
      %c0_7 = arith.constant 0 : index
      %15 = vector.load %arg5[%c0_6, %c0_7] : memref<32x32xf32, #tpu.memory_space<vmem>>, vector<32x32xf32>
      %cst = arith.constant dense<0.000000e+00> : vector<8x32xf32>
      %16 = tpu.matmul %14, %15, %cst {dimension_numbers = #tpu.dot_dimension_numbers<[1], [0], [0], [1], [0, 0, 1, 1], [], []>} : vector<8x32xf32>, vector<32x32xf32>, vector<8x32xf32> -> vector<8x32xf32>
      %c0_8 = arith.constant 0 : index
      %c0_9 = arith.constant 0 : index
      %17 = vector.load %arg9[%c0_8, %c0_9] : memref<1x32xf32, #tpu.memory_space<vmem>>, vector<1x32xf32>
      %18 = vector.broadcast %17 : vector<1x32xf32> to vector<8x32xf32>
      %19 = arith.addf %16, %18 : vector<8x32xf32>
      %c0_10 = arith.constant 0 : index
      %c0_11 = arith.constant 0 : index
      %20 = vector.load %arg14[%c0_10, %c0_11] : memref<8x32xf32, #tpu.memory_space<vmem>>, vector<8x32xf32>
      tpu.vector_store %arg14[%c0_10, %c0_11], %19 {strides = array<i32>} : memref<8x32xf32, #tpu.memory_space<vmem>>, vector<8x32xf32>,
      %cst_12 = arith.constant 0.000000e+00 : f32
      %21 = vector.broadcast %cst_12 : f32 to vector<8x32xf32>
      %c0_13 = arith.constant 0 : index
      %c0_14 = arith.constant 0 : index
      %22 = vector.load %arg15[%c0_13, %c0_14] : memref<8x32xf32, #tpu.memory_space<vmem>>, vector<8x32xf32>
      tpu.vector_store %arg15[%c0_13, %c0_14], %21 {strides = array<i32>} : memref<8x32xf32, #tpu.memory_space<vmem>>, vector<8x32xf32>,
      %cst_15 = arith.constant -1.000000e+30 : f32
      %23 = vector.broadcast %cst_15 : f32 to vector<4x8x1xf32>
      %c0_16 = arith.constant 0 : index
      %c0_17 = arith.constant 0 : index
      %c0_18 = arith.constant 0 : index
      %24 = vector.load %arg16[%c0_16, %c0_17, %c0_18] : memref<4x8x1xf32, #tpu.memory_space<vmem>>, vector<4x8x1xf32>
      tpu.vector_store %arg16[%c0_16, %c0_17, %c0_18], %23 {strides = array<i32>} : memref<4x8x1xf32, #tpu.memory_space<vmem>>, vector<4x8x1xf32>,
      %cst_19 = arith.constant 0.000000e+00 : f32
      %25 = vector.broadcast %cst_19 : f32 to vector<4x8x1xf32>
      %c0_20 = arith.constant 0 : index
      %c0_21 = arith.constant 0 : index
      %c0_22 = arith.constant 0 : index
      %26 = vector.load %arg17[%c0_20, %c0_21, %c0_22] : memref<4x8x1xf32, #tpu.memory_space<vmem>>, vector<4x8x1xf32>
      tpu.vector_store %arg17[%c0_20, %c0_21, %c0_22], %25 {strides = array<i32>} : memref<4x8x1xf32, #tpu.memory_space<vmem>>, vector<4x8x1xf32>,
    } else {
    }
    %8 = arith.extui %4 : i1 to i32
    %c0_i32_2 = arith.constant 0 : i32
    %9 = arith.cmpi ne, %8, %c0_i32_2 : i32
    scf.if %9 {
      %c0 = arith.constant 0 : index
      %c0_4 = arith.constant 0 : index
      %c0_5 = arith.constant 0 : index
      %13 = vector.load %arg4[%c0, %c0_4, %c0_5] : memref<1x8x32xf32, #tpu.memory_space<vmem>>, vector<1x8x32xf32>
      %14 = vector.shape_cast %13 : vector<1x8x32xf32> to vector<8x32xf32>
      %c0_6 = arith.constant 0 : index
      %c0_7 = arith.constant 0 : index
      %15 = vector.load %arg6[%c0_6, %c0_7] : memref<32x32xf32, #tpu.memory_space<vmem>>, vector<32x32xf32>
      %cst = arith.constant dense<0.000000e+00> : vector<8x32xf32>
      %16 = tpu.matmul %14, %15, %cst {dimension_numbers = #tpu.dot_dimension_numbers<[1], [0], [0], [1], [0, 0, 1, 1], [], []>} : vector<8x32xf32>, vector<32x32xf32>, vector<8x32xf32> -> vector<8x32xf32>
      %c0_8 = arith.constant 0 : index
      %c0_9 = arith.constant 0 : index
      %17 = vector.load %arg10[%c0_8, %c0_9] : memref<1x32xf32, #tpu.memory_space<vmem>>, vector<1x32xf32>
      %18 = vector.broadcast %17 : vector<1x32xf32> to vector<8x32xf32>
      %19 = arith.addf %16, %18 : vector<8x32xf32>
      %c0_10 = arith.constant 0 : index
      %c0_11 = arith.constant 0 : index
      %20 = vector.load %arg7[%c0_10, %c0_11] : memref<32x32xf32, #tpu.memory_space<vmem>>, vector<32x32xf32>
      %cst_12 = arith.constant dense<0.000000e+00> : vector<8x32xf32>
      %21 = tpu.matmul %14, %20, %cst_12 {dimension_numbers = #tpu.dot_dimension_numbers<[1], [0], [0], [1], [0, 0, 1, 1], [], []>} : vector<8x32xf32>, vector<32x32xf32>, vector<8x32xf32> -> vector<8x32xf32>
      %c0_13 = arith.constant 0 : index
      %c0_14 = arith.constant 0 : index
      %22 = vector.load %arg11[%c0_13, %c0_14] : memref<1x32xf32, #tpu.memory_space<vmem>>, vector<1x32xf32>
      %23 = vector.broadcast %22 : vector<1x32xf32> to vector<8x32xf32>
      %24 = arith.addf %21, %23 : vector<8x32xf32>
      %25 = tpu.iota {dimensions = array<i32: 0>} : vector<8x8xi32>
      %c8_i32 = arith.constant 8 : i32
      %26 = arith.muli %arg1, %c8_i32 : i32
      %27 = vector.broadcast %26 : i32 to vector<8x8xi32>
      %28 = arith.addi %25, %27 : vector<8x8xi32>
      %29 = tpu.iota {dimensions = array<i32: 1>} : vector<8x8xi32>
      %c8_i32_15 = arith.constant 8 : i32
      %30 = arith.muli %1, %c8_i32_15 : i32
      %31 = vector.broadcast %30 : i32 to vector<8x8xi32>
      %32 = arith.addi %29, %31 : vector<8x8xi32>
      %33 = arith.subi %32, %28 : vector<8x8xi32>
      %c-2_i32 = arith.constant -2 : i32
      %34 = vector.broadcast %c-2_i32 : i32 to vector<8x8xi32>
      %35 = arith.cmpi sge, %33, %34 : vector<8x8xi32>
      %c2_i32_16 = arith.constant 2 : i32
      %36 = vector.broadcast %c2_i32_16 : i32 to vector<8x8xi32>
      %37 = arith.cmpi sle, %33, %36 : vector<8x8xi32>
      %38 = arith.andi %35, %37 : vector<8x8xi1>
      %c0_17 = arith.constant 0 : index
      %c0_18 = arith.constant 0 : index
      %39 = vector.load %arg14[%c0_17, %c0_18] : memref<8x32xf32, #tpu.memory_space<vmem>>, vector<8x8xf32>
      %40 = vector.extract_strided_slice %19 {offsets = [0, 0], sizes = [8, 8], strides = [1, 1]} : vector<8x32xf32> to vector<8x8xf32>
      "tpu.trace_start"() <{level = 10 : i32, message = "qd,kd->qk"}> : () -> ()
      %cst_19 = arith.constant dense<0.000000e+00> : vector<8x8xf32>
      %41 = tpu.matmul %39, %40, %cst_19 {dimension_numbers = #tpu.dot_dimension_numbers<[1], [1], [0], [0], [0, 0, 1, 0], [], []>} : vector<8x8xf32>, vector<8x8xf32>, vector<8x8xf32> -> vector<8x8xf32>
      %cst_20 = arith.constant -1.000000e+30 : f32
      "tpu.trace_stop"() : () -> ()
      %42 = vector.broadcast %cst_20 : f32 to vector<8x8xf32>
      %43 = arith.select %38, %41, %42 : vector<8x8xi1>, vector<8x8xf32>
      %c0_21 = arith.constant 0 : index
      %c0_22 = arith.constant 0 : index
      %c0_23 = arith.constant 0 : index
      %44 = vector.load %arg16[%c0_21, %c0_22, %c0_23] : memref<4x8x1xf32, #tpu.memory_space<vmem>>, vector<1x8x1xf32>
      %45 = vector.shape_cast %44 : vector<1x8x1xf32> to vector<8x1xf32>
      %cst_24 = arith.constant dense<0xFF800000> : vector<8xf32>
      %46 = vector.multi_reduction <maximumf>, %43, %cst_24 [1] : vector<8x8xf32> to vector<8xf32>
      %47 = vector.shape_cast %46 : vector<8xf32> to vector<8x1xf32>
      %48 = arith.maximumf %45, %47 : vector<8x1xf32>
      %49 = arith.subf %45, %48 : vector<8x1xf32>
      %50 = math.exp %49 : vector<8x1xf32>
      %51 = vector.broadcast %48 : vector<8x1xf32> to vector<8x8xf32>
      %52 = arith.subf %43, %51 : vector<8x8xf32>
      %53 = math.exp %52 : vector<8x8xf32>
      %c0_25 = arith.constant 0 : index
      %c0_26 = arith.constant 0 : index
      %c0_27 = arith.constant 0 : index
      %54 = vector.load %arg17[%c0_25, %c0_26, %c0_27] : memref<4x8x1xf32, #tpu.memory_space<vmem>>, vector<1x8x1xf32>
      %55 = vector.shape_cast %54 : vector<1x8x1xf32> to vector<8x1xf32>
      %56 = arith.mulf %50, %55 : vector<8x1xf32>
      %cst_28 = arith.constant dense<0.000000e+00> : vector<8xf32>
      %57 = vector.multi_reduction <add>, %53, %cst_28 [1] : vector<8x8xf32> to vector<8xf32>
      %58 = vector.shape_cast %57 : vector<8xf32> to vector<8x1xf32>
      %59 = arith.addf %56, %58 : vector<8x1xf32>
      %c0_29 = arith.constant 0 : index
      %c0_30 = arith.constant 0 : index
      %c0_31 = arith.constant 0 : index
      %60 = vector.load %arg17[%c0_29, %c0_30, %c0_31] : memref<4x8x1xf32, #tpu.memory_space<vmem>>, vector<1x8x1xf32>
      %61 = vector.shape_cast %60 : vector<1x8x1xf32> to vector<8x1xf32>
      %62 = vector.shape_cast %59 : vector<8x1xf32> to vector<1x8x1xf32>
      tpu.vector_store %arg17[%c0_29, %c0_30, %c0_31], %62 {strides = array<i32>} : memref<4x8x1xf32, #tpu.memory_space<vmem>>, vector<1x8x1xf32>,
      %c0_32 = arith.constant 0 : index
      %c0_33 = arith.constant 0 : index
      %63 = vector.load %arg15[%c0_32, %c0_33] : memref<8x32xf32, #tpu.memory_space<vmem>>, vector<8x8xf32>
      %64 = vector.broadcast %50 : vector<8x1xf32> to vector<8x8xf32>
      %65 = arith.mulf %64, %63 : vector<8x8xf32>
      %66 = vector.extract_strided_slice %24 {offsets = [0, 0], sizes = [8, 8], strides = [1, 1]} : vector<8x32xf32> to vector<8x8xf32>
      %cst_34 = arith.constant dense<0.000000e+00> : vector<8x8xf32>
      %67 = tpu.matmul %53, %66, %cst_34 {dimension_numbers = #tpu.dot_dimension_numbers<[1], [0], [0], [1], [0, 0, 1, 1], [], []>} : vector<8x8xf32>, vector<8x8xf32>, vector<8x8xf32> -> vector<8x8xf32>
      %68 = arith.addf %65, %67 : vector<8x8xf32>
      %c0_35 = arith.constant 0 : index
      %c0_36 = arith.constant 0 : index
      %69 = vector.load %arg15[%c0_35, %c0_36] : memref<8x32xf32, #tpu.memory_space<vmem>>, vector<8x8xf32>
      tpu.vector_store %arg15[%c0_35, %c0_36], %68 {strides = array<i32>} : memref<8x32xf32, #tpu.memory_space<vmem>>, vector<8x8xf32>,
      %c0_37 = arith.constant 0 : index
      %c0_38 = arith.constant 0 : index
      %c0_39 = arith.constant 0 : index
      %70 = vector.load %arg16[%c0_37, %c0_38, %c0_39] : memref<4x8x1xf32, #tpu.memory_space<vmem>>, vector<1x8x1xf32>
      %71 = vector.shape_cast %70 : vector<1x8x1xf32> to vector<8x1xf32>
      %72 = vector.shape_cast %48 : vector<8x1xf32> to vector<1x8x1xf32>
      tpu.vector_store %arg16[%c0_37, %c0_38, %c0_39], %72 {strides = array<i32>} : memref<4x8x1xf32, #tpu.memory_space<vmem>>, vector<1x8x1xf32>,
      %c0_40 = arith.constant 0 : index
      %c8 = arith.constant 8 : index
      %73 = vector.load %arg14[%c0_40, %c8] : memref<8x32xf32, #tpu.memory_space<vmem>>, vector<8x8xf32>
      %74 = vector.extract_strided_slice %19 {offsets = [0, 8], sizes = [8, 8], strides = [1, 1]} : vector<8x32xf32> to vector<8x8xf32>
      "tpu.trace_start"() <{level = 10 : i32, message = "qd,kd->qk"}> : () -> ()
      %cst_41 = arith.constant dense<0.000000e+00> : vector<8x8xf32>
      %75 = tpu.matmul %73, %74, %cst_41 {dimension_numbers = #tpu.dot_dimension_numbers<[1], [1], [0], [0], [0, 0, 1, 0], [], []>} : vector<8x8xf32>, vector<8x8xf32>, vector<8x8xf32> -> vector<8x8xf32>
      %cst_42 = arith.constant -1.000000e+30 : f32
      "tpu.trace_stop"() : () -> ()
      %76 = vector.broadcast %cst_42 : f32 to vector<8x8xf32>
      %77 = arith.select %38, %75, %76 : vector<8x8xi1>, vector<8x8xf32>
      %c1 = arith.constant 1 : index
      %c0_43 = arith.constant 0 : index
      %c0_44 = arith.constant 0 : index
      %78 = vector.load %arg16[%c1, %c0_43, %c0_44] : memref<4x8x1xf32, #tpu.memory_space<vmem>>, vector<1x8x1xf32>
      %79 = vector.shape_cast %78 : vector<1x8x1xf32> to vector<8x1xf32>
      %cst_45 = arith.constant dense<0xFF800000> : vector<8xf32>
      %80 = vector.multi_reduction <maximumf>, %77, %cst_45 [1] : vector<8x8xf32> to vector<8xf32>
      %81 = vector.shape_cast %80 : vector<8xf32> to vector<8x1xf32>
      %82 = arith.maximumf %79, %81 : vector<8x1xf32>
      %83 = arith.subf %79, %82 : vector<8x1xf32>
      %84 = math.exp %83 : vector<8x1xf32>
      %85 = vector.broadcast %82 : vector<8x1xf32> to vector<8x8xf32>
      %86 = arith.subf %77, %85 : vector<8x8xf32>
      %87 = math.exp %86 : vector<8x8xf32>
      %c1_46 = arith.constant 1 : index
      %c0_47 = arith.constant 0 : index
      %c0_48 = arith.constant 0 : index
      %88 = vector.load %arg17[%c1_46, %c0_47, %c0_48] : memref<4x8x1xf32, #tpu.memory_space<vmem>>, vector<1x8x1xf32>
      %89 = vector.shape_cast %88 : vector<1x8x1xf32> to vector<8x1xf32>
      %90 = arith.mulf %84, %89 : vector<8x1xf32>
      %cst_49 = arith.constant dense<0.000000e+00> : vector<8xf32>
      %91 = vector.multi_reduction <add>, %87, %cst_49 [1] : vector<8x8xf32> to vector<8xf32>
      %92 = vector.shape_cast %91 : vector<8xf32> to vector<8x1xf32>
      %93 = arith.addf %90, %92 : vector<8x1xf32>
      %c1_50 = arith.constant 1 : index
      %c0_51 = arith.constant 0 : index
      %c0_52 = arith.constant 0 : index
      %94 = vector.load %arg17[%c1_50, %c0_51, %c0_52] : memref<4x8x1xf32, #tpu.memory_space<vmem>>, vector<1x8x1xf32>
      %95 = vector.shape_cast %94 : vector<1x8x1xf32> to vector<8x1xf32>
      %96 = vector.shape_cast %93 : vector<8x1xf32> to vector<1x8x1xf32>
      tpu.vector_store %arg17[%c1_50, %c0_51, %c0_52], %96 {strides = array<i32>} : memref<4x8x1xf32, #tpu.memory_space<vmem>>, vector<1x8x1xf32>,
      %c0_53 = arith.constant 0 : index
      %c8_54 = arith.constant 8 : index
      %97 = vector.load %arg15[%c0_53, %c8_54] : memref<8x32xf32, #tpu.memory_space<vmem>>, vector<8x8xf32>
      %98 = vector.broadcast %84 : vector<8x1xf32> to vector<8x8xf32>
      %99 = arith.mulf %98, %97 : vector<8x8xf32>
      %100 = vector.extract_strided_slice %24 {offsets = [0, 8], sizes = [8, 8], strides = [1, 1]} : vector<8x32xf32> to vector<8x8xf32>
      %cst_55 = arith.constant dense<0.000000e+00> : vector<8x8xf32>
      %101 = tpu.matmul %87, %100, %cst_55 {dimension_numbers = #tpu.dot_dimension_numbers<[1], [0], [0], [1], [0, 0, 1, 1], [], []>} : vector<8x8xf32>, vector<8x8xf32>, vector<8x8xf32> -> vector<8x8xf32>
      %102 = arith.addf %99, %101 : vector<8x8xf32>
      %c0_56 = arith.constant 0 : index
      %c8_57 = arith.constant 8 : index
      %103 = vector.load %arg15[%c0_56, %c8_57] : memref<8x32xf32, #tpu.memory_space<vmem>>, vector<8x8xf32>
      tpu.vector_store %arg15[%c0_56, %c8_57], %102 {strides = array<i32>} : memref<8x32xf32, #tpu.memory_space<vmem>>, vector<8x8xf32>,
      %c1_58 = arith.constant 1 : index
      %c0_59 = arith.constant 0 : index
      %c0_60 = arith.constant 0 : index
      %104 = vector.load %arg16[%c1_58, %c0_59, %c0_60] : memref<4x8x1xf32, #tpu.memory_space<vmem>>, vector<1x8x1xf32>
      %105 = vector.shape_cast %104 : vector<1x8x1xf32> to vector<8x1xf32>
      %106 = vector.shape_cast %82 : vector<8x1xf32> to vector<1x8x1xf32>
      tpu.vector_store %arg16[%c1_58, %c0_59, %c0_60], %106 {strides = array<i32>} : memref<4x8x1xf32, #tpu.memory_space<vmem>>, vector<1x8x1xf32>,
      %c0_61 = arith.constant 0 : index
      %c16 = arith.constant 16 : index
      %107 = vector.load %arg14[%c0_61, %c16] : memref<8x32xf32, #tpu.memory_space<vmem>>, vector<8x8xf32>
      %108 = vector.extract_strided_slice %19 {offsets = [0, 16], sizes = [8, 8], strides = [1, 1]} : vector<8x32xf32> to vector<8x8xf32>
      "tpu.trace_start"() <{level = 10 : i32, message = "qd,kd->qk"}> : () -> ()
      %cst_62 = arith.constant dense<0.000000e+00> : vector<8x8xf32>
      %109 = tpu.matmul %107, %108, %cst_62 {dimension_numbers = #tpu.dot_dimension_numbers<[1], [1], [0], [0], [0, 0, 1, 0], [], []>} : vector<8x8xf32>, vector<8x8xf32>, vector<8x8xf32> -> vector<8x8xf32>
      %cst_63 = arith.constant -1.000000e+30 : f32
      "tpu.trace_stop"() : () -> ()
      %110 = vector.broadcast %cst_63 : f32 to vector<8x8xf32>
      %111 = arith.select %38, %109, %110 : vector<8x8xi1>, vector<8x8xf32>
      %c2 = arith.constant 2 : index
      %c0_64 = arith.constant 0 : index
      %c0_65 = arith.constant 0 : index
      %112 = vector.load %arg16[%c2, %c0_64, %c0_65] : memref<4x8x1xf32, #tpu.memory_space<vmem>>, vector<1x8x1xf32>
      %113 = vector.shape_cast %112 : vector<1x8x1xf32> to vector<8x1xf32>
      %cst_66 = arith.constant dense<0xFF800000> : vector<8xf32>
      %114 = vector.multi_reduction <maximumf>, %111, %cst_66 [1] : vector<8x8xf32> to vector<8xf32>
      %115 = vector.shape_cast %114 : vector<8xf32> to vector<8x1xf32>
      %116 = arith.maximumf %113, %115 : vector<8x1xf32>
      %117 = arith.subf %113, %116 : vector<8x1xf32>
      %118 = math.exp %117 : vector<8x1xf32>
      %119 = vector.broadcast %116 : vector<8x1xf32> to vector<8x8xf32>
      %120 = arith.subf %111, %119 : vector<8x8xf32>
      %121 = math.exp %120 : vector<8x8xf32>
      %c2_67 = arith.constant 2 : index
      %c0_68 = arith.constant 0 : index
      %c0_69 = arith.constant 0 : index
      %122 = vector.load %arg17[%c2_67, %c0_68, %c0_69] : memref<4x8x1xf32, #tpu.memory_space<vmem>>, vector<1x8x1xf32>
      %123 = vector.shape_cast %122 : vector<1x8x1xf32> to vector<8x1xf32>
      %124 = arith.mulf %118, %123 : vector<8x1xf32>
      %cst_70 = arith.constant dense<0.000000e+00> : vector<8xf32>
      %125 = vector.multi_reduction <add>, %121, %cst_70 [1] : vector<8x8xf32> to vector<8xf32>
      %126 = vector.shape_cast %125 : vector<8xf32> to vector<8x1xf32>
      %127 = arith.addf %124, %126 : vector<8x1xf32>
      %c2_71 = arith.constant 2 : index
      %c0_72 = arith.constant 0 : index
      %c0_73 = arith.constant 0 : index
      %128 = vector.load %arg17[%c2_71, %c0_72, %c0_73] : memref<4x8x1xf32, #tpu.memory_space<vmem>>, vector<1x8x1xf32>
      %129 = vector.shape_cast %128 : vector<1x8x1xf32> to vector<8x1xf32>
      %130 = vector.shape_cast %127 : vector<8x1xf32> to vector<1x8x1xf32>
      tpu.vector_store %arg17[%c2_71, %c0_72, %c0_73], %130 {strides = array<i32>} : memref<4x8x1xf32, #tpu.memory_space<vmem>>, vector<1x8x1xf32>,
      %c0_74 = arith.constant 0 : index
      %c16_75 = arith.constant 16 : index
      %131 = vector.load %arg15[%c0_74, %c16_75] : memref<8x32xf32, #tpu.memory_space<vmem>>, vector<8x8xf32>
      %132 = vector.broadcast %118 : vector<8x1xf32> to vector<8x8xf32>
      %133 = arith.mulf %132, %131 : vector<8x8xf32>
      %134 = vector.extract_strided_slice %24 {offsets = [0, 16], sizes = [8, 8], strides = [1, 1]} : vector<8x32xf32> to vector<8x8xf32>
      %cst_76 = arith.constant dense<0.000000e+00> : vector<8x8xf32>
      %135 = tpu.matmul %121, %134, %cst_76 {dimension_numbers = #tpu.dot_dimension_numbers<[1], [0], [0], [1], [0, 0, 1, 1], [], []>} : vector<8x8xf32>, vector<8x8xf32>, vector<8x8xf32> -> vector<8x8xf32>
      %136 = arith.addf %133, %135 : vector<8x8xf32>
      %c0_77 = arith.constant 0 : index
      %c16_78 = arith.constant 16 : index
      %137 = vector.load %arg15[%c0_77, %c16_78] : memref<8x32xf32, #tpu.memory_space<vmem>>, vector<8x8xf32>
      tpu.vector_store %arg15[%c0_77, %c16_78], %136 {strides = array<i32>} : memref<8x32xf32, #tpu.memory_space<vmem>>, vector<8x8xf32>,
      %c2_79 = arith.constant 2 : index
      %c0_80 = arith.constant 0 : index
      %c0_81 = arith.constant 0 : index
      %138 = vector.load %arg16[%c2_79, %c0_80, %c0_81] : memref<4x8x1xf32, #tpu.memory_space<vmem>>, vector<1x8x1xf32>
      %139 = vector.shape_cast %138 : vector<1x8x1xf32> to vector<8x1xf32>
      %140 = vector.shape_cast %116 : vector<8x1xf32> to vector<1x8x1xf32>
      tpu.vector_store %arg16[%c2_79, %c0_80, %c0_81], %140 {strides = array<i32>} : memref<4x8x1xf32, #tpu.memory_space<vmem>>, vector<1x8x1xf32>,
      %c0_82 = arith.constant 0 : index
      %c24 = arith.constant 24 : index
      %141 = vector.load %arg14[%c0_82, %c24] : memref<8x32xf32, #tpu.memory_space<vmem>>, vector<8x8xf32>
      %142 = vector.extract_strided_slice %19 {offsets = [0, 24], sizes = [8, 8], strides = [1, 1]} : vector<8x32xf32> to vector<8x8xf32>
      "tpu.trace_start"() <{level = 10 : i32, message = "qd,kd->qk"}> : () -> ()
      %cst_83 = arith.constant dense<0.000000e+00> : vector<8x8xf32>
      %143 = tpu.matmul %141, %142, %cst_83 {dimension_numbers = #tpu.dot_dimension_numbers<[1], [1], [0], [0], [0, 0, 1, 0], [], []>} : vector<8x8xf32>, vector<8x8xf32>, vector<8x8xf32> -> vector<8x8xf32>
      %cst_84 = arith.constant -1.000000e+30 : f32
      "tpu.trace_stop"() : () -> ()
      %144 = vector.broadcast %cst_84 : f32 to vector<8x8xf32>
      %145 = arith.select %38, %143, %144 : vector<8x8xi1>, vector<8x8xf32>
      %c3 = arith.constant 3 : index
      %c0_85 = arith.constant 0 : index
      %c0_86 = arith.constant 0 : index
      %146 = vector.load %arg16[%c3, %c0_85, %c0_86] : memref<4x8x1xf32, #tpu.memory_space<vmem>>, vector<1x8x1xf32>
      %147 = vector.shape_cast %146 : vector<1x8x1xf32> to vector<8x1xf32>
      %cst_87 = arith.constant dense<0xFF800000> : vector<8xf32>
      %148 = vector.multi_reduction <maximumf>, %145, %cst_87 [1] : vector<8x8xf32> to vector<8xf32>
      %149 = vector.shape_cast %148 : vector<8xf32> to vector<8x1xf32>
      %150 = arith.maximumf %147, %149 : vector<8x1xf32>
      %151 = arith.subf %147, %150 : vector<8x1xf32>
      %152 = math.exp %151 : vector<8x1xf32>
      %153 = vector.broadcast %150 : vector<8x1xf32> to vector<8x8xf32>
      %154 = arith.subf %145, %153 : vector<8x8xf32>
      %155 = math.exp %154 : vector<8x8xf32>
      %c3_88 = arith.constant 3 : index
      %c0_89 = arith.constant 0 : index
      %c0_90 = arith.constant 0 : index
      %156 = vector.load %arg17[%c3_88, %c0_89, %c0_90] : memref<4x8x1xf32, #tpu.memory_space<vmem>>, vector<1x8x1xf32>
      %157 = vector.shape_cast %156 : vector<1x8x1xf32> to vector<8x1xf32>
      %158 = arith.mulf %152, %157 : vector<8x1xf32>
      %cst_91 = arith.constant dense<0.000000e+00> : vector<8xf32>
      %159 = vector.multi_reduction <add>, %155, %cst_91 [1] : vector<8x8xf32> to vector<8xf32>
      %160 = vector.shape_cast %159 : vector<8xf32> to vector<8x1xf32>
      %161 = arith.addf %158, %160 : vector<8x1xf32>
      %c3_92 = arith.constant 3 : index
      %c0_93 = arith.constant 0 : index
      %c0_94 = arith.constant 0 : index
      %162 = vector.load %arg17[%c3_92, %c0_93, %c0_94] : memref<4x8x1xf32, #tpu.memory_space<vmem>>, vector<1x8x1xf32>
      %163 = vector.shape_cast %162 : vector<1x8x1xf32> to vector<8x1xf32>
      %164 = vector.shape_cast %161 : vector<8x1xf32> to vector<1x8x1xf32>
      tpu.vector_store %arg17[%c3_92, %c0_93, %c0_94], %164 {strides = array<i32>} : memref<4x8x1xf32, #tpu.memory_space<vmem>>, vector<1x8x1xf32>,
      %c0_95 = arith.constant 0 : index
      %c24_96 = arith.constant 24 : index
      %165 = vector.load %arg15[%c0_95, %c24_96] : memref<8x32xf32, #tpu.memory_space<vmem>>, vector<8x8xf32>
      %166 = vector.broadcast %152 : vector<8x1xf32> to vector<8x8xf32>
      %167 = arith.mulf %166, %165 : vector<8x8xf32>
      %168 = vector.extract_strided_slice %24 {offsets = [0, 24], sizes = [8, 8], strides = [1, 1]} : vector<8x32xf32> to vector<8x8xf32>
      %cst_97 = arith.constant dense<0.000000e+00> : vector<8x8xf32>
      %169 = tpu.matmul %155, %168, %cst_97 {dimension_numbers = #tpu.dot_dimension_numbers<[1], [0], [0], [1], [0, 0, 1, 1], [], []>} : vector<8x8xf32>, vector<8x8xf32>, vector<8x8xf32> -> vector<8x8xf32>
      %170 = arith.addf %167, %169 : vector<8x8xf32>
      %c0_98 = arith.constant 0 : index
      %c24_99 = arith.constant 24 : index
      %171 = vector.load %arg15[%c0_98, %c24_99] : memref<8x32xf32, #tpu.memory_space<vmem>>, vector<8x8xf32>
      tpu.vector_store %arg15[%c0_98, %c24_99], %170 {strides = array<i32>} : memref<8x32xf32, #tpu.memory_space<vmem>>, vector<8x8xf32>,
      %c3_100 = arith.constant 3 : index
      %c0_101 = arith.constant 0 : index
      %c0_102 = arith.constant 0 : index
      %172 = vector.load %arg16[%c3_100, %c0_101, %c0_102] : memref<4x8x1xf32, #tpu.memory_space<vmem>>, vector<1x8x1xf32>
      %173 = vector.shape_cast %172 : vector<1x8x1xf32> to vector<8x1xf32>
      %174 = vector.shape_cast %150 : vector<8x1xf32> to vector<1x8x1xf32>
      tpu.vector_store %arg16[%c3_100, %c0_101, %c0_102], %174 {strides = array<i32>} : memref<4x8x1xf32, #tpu.memory_space<vmem>>, vector<1x8x1xf32>,
    } else {
    }
    %c2_i32 = arith.constant 2 : i32
    %10 = arith.cmpi eq, %arg2, %c2_i32 : i32
    %11 = arith.extui %10 : i1 to i32
    %c0_i32_3 = arith.constant 0 : i32
    %12 = arith.cmpi ne, %11, %c0_i32_3 : i32
    scf.if %12 {
      %c0 = arith.constant 0 : index
      %c0_4 = arith.constant 0 : index
      %c0_5 = arith.constant 0 : index
      %13 = vector.load %arg17[%c0, %c0_4, %c0_5] : memref<4x8x1xf32, #tpu.memory_space<vmem>>, vector<1x8x1xf32>
      %14 = vector.shape_cast %13 : vector<1x8x1xf32> to vector<8x1xf32>
      %15 = tpu.reciprocal %14 {approx = true} : vector<8x1xf32> -> vector<8x1xf32>
      %16 = arith.mulf %14, %15 : vector<8x1xf32>
      %cst = arith.constant 2.000000e+00 : f32
      %17 = vector.broadcast %cst : f32 to vector<8x1xf32>
      %18 = arith.subf %17, %16 : vector<8x1xf32>
      %19 = arith.mulf %15, %18 : vector<8x1xf32>
      %c0_6 = arith.constant 0 : index
      %c0_7 = arith.constant 0 : index
      %20 = vector.load %arg15[%c0_6, %c0_7] : memref<8x32xf32, #tpu.memory_space<vmem>>, vector<8x8xf32>
      %21 = vector.broadcast %19 : vector<8x1xf32> to vector<8x8xf32>
      %22 = arith.mulf %20, %21 : vector<8x8xf32>
      %c0_8 = arith.constant 0 : index
      %c0_9 = arith.constant 0 : index
      %23 = vector.load %arg15[%c0_8, %c0_9] : memref<8x32xf32, #tpu.memory_space<vmem>>, vector<8x8xf32>
      tpu.vector_store %arg15[%c0_8, %c0_9], %22 {strides = array<i32>} : memref<8x32xf32, #tpu.memory_space<vmem>>, vector<8x8xf32>,
      %c1 = arith.constant 1 : index
      %c0_10 = arith.constant 0 : index
      %c0_11 = arith.constant 0 : index
      %24 = vector.load %arg17[%c1, %c0_10, %c0_11] : memref<4x8x1xf32, #tpu.memory_space<vmem>>, vector<1x8x1xf32>
      %25 = vector.shape_cast %24 : vector<1x8x1xf32> to vector<8x1xf32>
      %26 = tpu.reciprocal %25 {approx = true} : vector<8x1xf32> -> vector<8x1xf32>
      %27 = arith.mulf %25, %26 : vector<8x1xf32>
      %cst_12 = arith.constant 2.000000e+00 : f32
      %28 = vector.broadcast %cst_12 : f32 to vector<8x1xf32>
      %29 = arith.subf %28, %27 : vector<8x1xf32>
      %30 = arith.mulf %26, %29 : vector<8x1xf32>
      %c0_13 = arith.constant 0 : index
      %c8 = arith.constant 8 : index
      %31 = vector.load %arg15[%c0_13, %c8] : memref<8x32xf32, #tpu.memory_space<vmem>>, vector<8x8xf32>
      %32 = vector.broadcast %30 : vector<8x1xf32> to vector<8x8xf32>
      %33 = arith.mulf %31, %32 : vector<8x8xf32>
      %c0_14 = arith.constant 0 : index
      %c8_15 = arith.constant 8 : index
      %34 = vector.load %arg15[%c0_14, %c8_15] : memref<8x32xf32, #tpu.memory_space<vmem>>, vector<8x8xf32>
      tpu.vector_store %arg15[%c0_14, %c8_15], %33 {strides = array<i32>} : memref<8x32xf32, #tpu.memory_space<vmem>>, vector<8x8xf32>,
      %c2 = arith.constant 2 : index
      %c0_16 = arith.constant 0 : index
      %c0_17 = arith.constant 0 : index
      %35 = vector.load %arg17[%c2, %c0_16, %c0_17] : memref<4x8x1xf32, #tpu.memory_space<vmem>>, vector<1x8x1xf32>
      %36 = vector.shape_cast %35 : vector<1x8x1xf32> to vector<8x1xf32>
      %37 = tpu.reciprocal %36 {approx = true} : vector<8x1xf32> -> vector<8x1xf32>
      %38 = arith.mulf %36, %37 : vector<8x1xf32>
      %cst_18 = arith.constant 2.000000e+00 : f32
      %39 = vector.broadcast %cst_18 : f32 to vector<8x1xf32>
      %40 = arith.subf %39, %38 : vector<8x1xf32>
      %41 = arith.mulf %37, %40 : vector<8x1xf32>
      %c0_19 = arith.constant 0 : index
      %c16 = arith.constant 16 : index
      %42 = vector.load %arg15[%c0_19, %c16] : memref<8x32xf32, #tpu.memory_space<vmem>>, vector<8x8xf32>
      %43 = vector.broadcast %41 : vector<8x1xf32> to vector<8x8xf32>
      %44 = arith.mulf %42, %43 : vector<8x8xf32>
      %c0_20 = arith.constant 0 : index
      %c16_21 = arith.constant 16 : index
      %45 = vector.load %arg15[%c0_20, %c16_21] : memref<8x32xf32, #tpu.memory_space<vmem>>, vector<8x8xf32>
      tpu.vector_store %arg15[%c0_20, %c16_21], %44 {strides = array<i32>} : memref<8x32xf32, #tpu.memory_space<vmem>>, vector<8x8xf32>,
      %c3 = arith.constant 3 : index
      %c0_22 = arith.constant 0 : index
      %c0_23 = arith.constant 0 : index
      %46 = vector.load %arg17[%c3, %c0_22, %c0_23] : memref<4x8x1xf32, #tpu.memory_space<vmem>>, vector<1x8x1xf32>
      %47 = vector.shape_cast %46 : vector<1x8x1xf32> to vector<8x1xf32>
      %48 = tpu.reciprocal %47 {approx = true} : vector<8x1xf32> -> vector<8x1xf32>
      %49 = arith.mulf %47, %48 : vector<8x1xf32>
      %cst_24 = arith.constant 2.000000e+00 : f32
      %50 = vector.broadcast %cst_24 : f32 to vector<8x1xf32>
      %51 = arith.subf %50, %49 : vector<8x1xf32>
      %52 = arith.mulf %48, %51 : vector<8x1xf32>
      %c0_25 = arith.constant 0 : index
      %c24 = arith.constant 24 : index
      %53 = vector.load %arg15[%c0_25, %c24] : memref<8x32xf32, #tpu.memory_space<vmem>>, vector<8x8xf32>
      %54 = vector.broadcast %52 : vector<8x1xf32> to vector<8x8xf32>
      %55 = arith.mulf %53, %54 : vector<8x8xf32>
      %c0_26 = arith.constant 0 : index
      %c24_27 = arith.constant 24 : index
      %56 = vector.load %arg15[%c0_26, %c24_27] : memref<8x32xf32, #tpu.memory_space<vmem>>, vector<8x8xf32>
      tpu.vector_store %arg15[%c0_26, %c24_27], %55 {strides = array<i32>} : memref<8x32xf32, #tpu.memory_space<vmem>>, vector<8x8xf32>,
      %c0_28 = arith.constant 0 : index
      %c0_29 = arith.constant 0 : index
      %57 = vector.load %arg15[%c0_28, %c0_29] : memref<8x32xf32, #tpu.memory_space<vmem>>, vector<8x32xf32>
      %c0_30 = arith.constant 0 : index
      %c0_31 = arith.constant 0 : index
      %58 = vector.load %arg8[%c0_30, %c0_31] : memref<32x32xf32, #tpu.memory_space<vmem>>, vector<32x32xf32>
      %cst_32 = arith.constant dense<0.000000e+00> : vector<8x32xf32>
      %59 = tpu.matmul %57, %58, %cst_32 {dimension_numbers = #tpu.dot_dimension_numbers<[1], [0], [0], [1], [0, 0, 1, 1], [], []>} : vector<8x32xf32>, vector<32x32xf32>, vector<8x32xf32> -> vector<8x32xf32>
      %c0_33 = arith.constant 0 : index
      %c0_34 = arith.constant 0 : index
      %60 = vector.load %arg12[%c0_33, %c0_34] : memref<1x32xf32, #tpu.memory_space<vmem>>, vector<1x32xf32>
      %61 = vector.broadcast %60 : vector<1x32xf32> to vector<8x32xf32>
      %62 = arith.addf %59, %61 : vector<8x32xf32>
      %c0_35 = arith.constant 0 : index
      %c0_36 = arith.constant 0 : index
      %c0_37 = arith.constant 0 : index
      %63 = vector.load %arg13[%c0_35, %c0_36, %c0_37] : memref<1x8x32xf32, #tpu.memory_space<vmem>>, vector<1x8x32xf32>
      %64 = vector.shape_cast %63 : vector<1x8x32xf32> to vector<8x32xf32>
      %65 = vector.shape_cast %62 : vector<8x32xf32> to vector<1x8x32xf32>
      tpu.vector_store %arg13[%c0_35, %c0_36, %c0_37], %65 {strides = array<i32>} : memref<1x8x32xf32, #tpu.memory_space<vmem>>, vector<1x8x32xf32>,
    } else {
    }
    return
  }
  func.func @transform_0(%arg0: i32, %arg1: i32, %arg2: i32) -> (i32, i32, i32) {
    %c0_i32 = arith.constant 0 : i32
    %c0_i32_0 = arith.constant 0 : i32
    return %arg0, %arg1, %c0_i32 : i32, i32, i32
  }
  func.func @transform_1(%arg0: i32, %arg1: i32, %arg2: i32) -> (i32, i32, i32) {
    %c-1_i32 = arith.constant -1 : i32
    %0 = arith.addi %arg1, %c-1_i32 : i32
    %1 = arith.addi %0, %arg2 : i32
    %c0_i32 = arith.constant 0 : i32
    %c0_i32_0 = arith.constant 0 : i32
    %2 = arith.maxsi %c0_i32, %1 : i32
    %3 = arith.minsi %c0_i32_0, %2 : i32
    %c0_i32_1 = arith.constant 0 : i32
    %c0_i32_2 = arith.constant 0 : i32
    return %arg0, %3, %c0_i32_1 : i32, i32, i32
  }
  func.func @transform_2(%arg0: i32, %arg1: i32, %arg2: i32) -> (i32, i32) {
    %c0_i32 = arith.constant 0 : i32
    %c0_i32_0 = arith.constant 0 : i32
    %c0_i32_1 = arith.constant 0 : i32
    return %c0_i32, %c0_i32_0 : i32, i32
  }
  func.func @transform_3(%arg0: i32, %arg1: i32, %arg2: i32) -> (i32, i32) {
    %c0_i32 = arith.constant 0 : i32
    %c0_i32_0 = arith.constant 0 : i32
    %c0_i32_1 = arith.constant 0 : i32
    return %c0_i32, %c0_i32_0 : i32, i32
  }
  func.func @transform_4(%arg0: i32, %arg1: i32, %arg2: i32) -> (i32, i32) {
    %c0_i32 = arith.constant 0 : i32
    %c0_i32_0 = arith.constant 0 : i32
    %c0_i32_1 = arith.constant 0 : i32
    return %c0_i32, %c0_i32_0 : i32, i32
  }
  func.func @transform_5(%arg0: i32, %arg1: i32, %arg2: i32) -> (i32, i32) {
    %c0_i32 = arith.constant 0 : i32
    %c0_i32_0 = arith.constant 0 : i32
    %c0_i32_1 = arith.constant 0 : i32
    return %c0_i32, %c0_i32_0 : i32, i32
  }
  func.func @transform_6(%arg0: i32, %arg1: i32, %arg2: i32) -> (i32, i32) {
    %c0_i32 = arith.constant 0 : i32
    %c0_i32_0 = arith.constant 0 : i32
    %c0_i32_1 = arith.constant 0 : i32
    return %c0_i32, %c0_i32_0 : i32, i32
  }
  func.func @transform_7(%arg0: i32, %arg1: i32, %arg2: i32) -> (i32, i32) {
    %c0_i32 = arith.constant 0 : i32
    %c0_i32_0 = arith.constant 0 : i32
    %c0_i32_1 = arith.constant 0 : i32
    return %c0_i32, %c0_i32_0 : i32, i32
  }
  func.func @transform_8(%arg0: i32, %arg1: i32, %arg2: i32) -> (i32, i32) {
    %c0_i32 = arith.constant 0 : i32
    %c0_i32_0 = arith.constant 0 : i32
    %c0_i32_1 = arith.constant 0 : i32
    return %c0_i32, %c0_i32_0 : i32, i32
  }
  func.func @transform_9(%arg0: i32, %arg1: i32, %arg2: i32) -> (i32, i32) {
    %c0_i32 = arith.constant 0 : i32
    %c0_i32_0 = arith.constant 0 : i32
    %c0_i32_1 = arith.constant 0 : i32
    return %c0_i32, %c0_i32_0 : i32, i32
  }
  func.func @transform_10(%arg0: i32, %arg1: i32, %arg2: i32) -> (i32, i32, i32) {
    %c0_i32 = arith.constant 0 : i32
    %c0_i32_0 = arith.constant 0 : i32
    return %arg0, %arg1, %c0_i32 : i32, i32, i32
  }
}

</mosaic_0001>

<bundles_post_ra>
// kernel: tpu_custom_call.1
= control target key start
LH: loop header
LB: loop body
LE: loop exit
PB: predicated region body
PF: predicated region fallthrough
CT: control target
= control target key end

     0   :  { %s3006_s0 = inlined_call_operand.hbm [shape: f32[2,8,32], index: 0, kind: input, shape index: {}]   ;;  %s3007_s1 = inlined_call_operand.hbm [shape: f32[2,8,32], index: 1, kind: input, shape index: {}]   ;;  %s3008_s2 = inlined_call_operand.hbm [shape: f32[32,32], index: 2, kind: input, shape index: {}]   ;;  %s3009_s3 = inlined_call_operand.hbm [shape: f32[32,32], index: 3, kind: input, shape index: {}]   ;;  %s3010_s4 = inlined_call_operand.hbm [shape: f32[32,32], index: 4, kind: input, shape index: {}]   ;;  %s3011_s5 = inlined_call_operand.hbm [shape: f32[32,32], index: 5, kind: input, shape index: {}]   ;;  %s3012_s6 = inlined_call_operand.vmem [shape: f32[1,32], index: 6, kind: input, shape index: {}]   ;;  %s3013_s7 = inlined_call_operand.vmem [shape: f32[1,32], index: 7, kind: input, shape index: {}]   ;;  %s3014_s8 = inlined_call_operand.vmem [shape: f32[1,32], index: 8, kind: input, shape index: {}]   ;;  %s3015_s9 = inlined_call_operand.vmem [shape: f32[1,32], index: 9, kind: input, shape index: {}]   ;;  %s3016_s10 = inlined_call_operand.hbm [shape: f32[2,8,32], index: 10, kind: output, shape index: {}]  }
   0x1   :  { %3023 = sst [smem:[#allocation29_spill]] %s3006_s0 }
   0x2   :  { %3024 = sst [smem:[#allocation30_spill]] %s3008_s2 }
   0x3   :  { %3025 = sst [smem:[#allocation31_spill]] %s3009_s3 }
   0x4   :  { %3026 = sst [smem:[#allocation32_spill]] %s3010_s4 }
   0x5   :  { %3027 = sst [smem:[#allocation33_spill]] %s3011_s5 }
   0x6   :  { %3028 = sst [smem:[#allocation34_spill]] %s3016_s10 }
   0x7   :  { %15 = vsyncpa [#allocation7], 0 }
   0x8   :  { %17 = vsyncpa [#allocation7 + $0x1], 0 }
   0x9   :  { %18 = vsyncpa [#allocation10], 0 }
   0xa   :  { %20 = vsyncpa [#allocation10 + $0x1], 0 }
   0xb   :  { %21 = vsyncpa [#allocation13], 0 }
   0xc   :  { %22 = vsyncpa [#allocation16], 0 }
   0xd   :  { %23 = vsyncpa [#allocation8], 0 }
   0xe   :  { %25 = vsyncpa [#allocation8 + $0x1], 0  ;;  %s2606_s13 = smov 0   ;;  %s2608_s14 = smov 0  }
   0xf   :  { %s2610_s15 = smov 0   ;;  %s2612_s16 = smov 0  }
  0x10   :  { %s2614_s17 = smov 0   ;;  %s2616_s18 = smov 0  }
  0x11   :  { %s2618_s19 = smov 0   ;;  %s2620_s20 = smov 0  }
  0x12 LB: > { %3029 = sst [smem:[#allocation24_spill]] %s2497_s13  ;;  %s2647_s21 = sadd.s32 4294967295, %s2525_s20   ;;  %s2525_s20 = sphi %s2620_s20, %s31_s20   ;;  %s2521_s19 = sphi %s2618_s19, %s3060_s19   ;;  %s2517_s18 = sphi %s2616_s18, %s3059_s18   ;;  %s2513_s17 = sphi %s2614_s17, %s3058_s17   ;;  %s2509_s16 = sphi %s2612_s16, %s3057_s16   ;;  %s2505_s15 = sphi %s2610_s15, %s3063_s15   ;;  %s2501_s14 = sphi %s2608_s14, %s3062_s14   ;;  %s2497_s13 = sphi %s2606_s13, %s3061_s13  }
  0x13   : > { %3030 = sst [smem:[#allocation25_spill]] %s2517_s18  ;;  %p1914_p0 = scmp.ge.s32.totalorder %s2525_s20, 1 }
  0x14   : > { %3031 = sst [smem:[#allocation26_spill]] %s2521_s19  ;;  %p3022_p1 = scmp.eq.s32.totalorder %s2647_s21, 0 }
  0x15   : > { %p319_p2 = scmp.lt.s32.totalorder %s2525_s20, 7  ;;  %s2527_s23 = smov [#allocation11]  }
  0x16   : > { %s331_s24 = sshll.u32 %s2527_s23, 4  ;;  %s2528_s26 = smov [#allocation12]   ;;  %s332_s24 = int_to_ptr.vmem [resolvable:$true] %s331_s24 }
  0x17   : > { %p2652_p3 = pnand %p1914_p0, %p319_p2  ;;  %s344_s27 = sshll.u32 %s2528_s26, 4  ;;  %s345_s27 = int_to_ptr.vmem [resolvable:$true] %s344_s27 }
  0x18   : > { %s2529_s28 = smov [#allocation14]   ;;  %s2264_s30 = scalar_lea.vmem %s332_s24, 512 }
  0x19   : > { %p2106_p4 = pneg %p2652_p3  ;;  %s357_s29 = sshll.u32 %s2529_s28, 4  ;;  %s358_s29 = int_to_ptr.vmem [resolvable:$true] %s357_s29 }
  0x1a   : > { %p2265_p7 = scmp.ne.s32.totalorder %s332_s24, %s2264_s30  ;;  %p2272_p10 = scmp.lt.s32.totalorder %s332_s24, %s332_s24 }
  0x1b   : > { %p2660_p5 = pnand %p2106_p4, %p3022_p1  ;;  %p2273_p11 = scmp.lt.s32.totalorder %s2264_s30, %s2264_s30 }
  0x1d   : > { %p2255_p6 = pneg %p2660_p5  ;;  %p2274_p12 = por %p2273_p11, %p2272_p10 }
  0x1f   : > { %p2267_p8 = pnand %p2265_p7, %p2255_p6 }
  0x21   : > { %p2268_p9 = pneg %p2267_p8 }
  0x23   : > { %p2275_p13 = pnand %p2274_p12, %p2268_p9 }
  0x25   : > { %2278 = shalt.err (!%p2275_p13)
}
  0x26   : > { %s2530_s11 = smov 128   ;;  %s2531_s12 = smov 8  }
  0x27   : > { %s3034_s2 = sld [smem:[#allocation30_spill]]  ;;  %s2290_s28 = scalar_lea.vmem %s345_s27, 512 }
  0x28   : > { %p2291_p0 = scmp.ne.s32.totalorder %s345_s27, %s2290_s28  ;;  %p2298_p7 = scmp.lt.s32.totalorder %s345_s27, %s345_s27 }
  0x29   : > { %p2299_p8 = scmp.lt.s32.totalorder %s2290_s28, %s2290_s28 }
  0x2a   : > { %p2293_p2 = pnand %p2291_p0, %p2255_p6 }
  0x2b   : > { %p2300_p9 = por %p2299_p8, %p2298_p7 }
  0x2c   : > { %p2294_p4 = pneg %p2293_p2 }
  0x2d   : > { %2109 = dma.hbm_to_vmem [thread:$0]  (!%p2660_p5), %s3034_s2, 512, %s332_s24, [#allocation10], %s2530_s11, %s2530_s11, %s2531_s12  }
  0x2e   : > { %p2301_p10 = pnand %p2300_p9, %p2294_p4 }
  0x30   : > { %2304 = shalt.err (!%p2301_p10)
}
  0x31   : > { %s3035_s3 = sld [smem:[#allocation31_spill]]  ;;  %s2316_s24 = scalar_lea.vmem %s358_s29, 512 }
  0x32   : > { %p2317_p11 = scmp.ne.s32.totalorder %s358_s29, %s2316_s24  ;;  %p2324_p0 = scmp.lt.s32.totalorder %s358_s29, %s358_s29 }
  0x33   : > { %p2325_p2 = scmp.lt.s32.totalorder %s2316_s24, %s2316_s24 }
  0x34   : > { %p2319_p12 = pnand %p2317_p11, %p2255_p6 }
  0x35   : > { %p2326_p4 = por %p2325_p2, %p2324_p0 }
  0x36   : > { %p2320_p13 = pneg %p2319_p12 }
  0x37   : > { %2112 = dma.hbm_to_vmem [thread:$0]  (!%p2660_p5), %s3035_s3, 512, %s345_s27, [#allocation13], %s2530_s11, %s2530_s11, %s2531_s12  }
  0x38   : > { %p2327_p7 = pnand %p2326_p4, %p2320_p13 }
  0x3a   : > { %2330 = shalt.err (!%p2327_p7)
}
  0x3b   : > { %s3036_s4 = sld [smem:[#allocation32_spill]]  ;;  %s2532_s27 = smov [#allocation15]  }
  0x3c   : > { %s370_s26 = sshll.u32 %s2532_s27, 4  ;;  %s371_s26 = int_to_ptr.vmem [resolvable:$true] %s370_s26 }
  0x3d   : > { %s2342_s28 = scalar_lea.vmem %s371_s26, 512  ;;  %p2350_p11 = scmp.lt.s32.totalorder %s371_s26, %s371_s26 }
  0x3e   : > { %p2343_p8 = scmp.ne.s32.totalorder %s371_s26, %s2342_s28  ;;  %p2351_p12 = scmp.lt.s32.totalorder %s2342_s28, %s2342_s28 }
  0x40   : > { %p2345_p9 = pnand %p2343_p8, %p2255_p6  ;;  %p2352_p13 = por %p2351_p12, %p2350_p11 }
  0x41   : > { %2115 = dma.hbm_to_vmem [thread:$0]  (!%p2660_p5), %s3036_s4, 512, %s358_s29, [#allocation13], %s2530_s11, %s2530_s11, %s2531_s12  }
  0x42   : > { %p2346_p10 = pneg %p2345_p9 }
  0x44   : > { %p2353_p0 = pnand %p2352_p13, %p2346_p10 }
  0x46   : > { %2356 = shalt.err (!%p2353_p0)
}
  0x47   : > { %s3037_s5 = sld [smem:[#allocation33_spill]]  ;;  %s1903_s25 = sadd.s32 4294967294, %s2525_s20  }
  0x48   : > { %s43_s24 = sadd.s32 1, %s2517_s18  ;;  %s50_s10 = sadd.s32 1, %s2521_s19 }
  0x49   : > { %p44_p6 = scmp.ge.s32.totalorder %s43_s24, 3  ;;  %s59_s23 = sadd.s32 1, %s2505_s15 }
  0x4a   : > { %p66_p2 = scmp.ne.s32.totalorder %s2505_s15, %s2501_s14  ;;  %p67_p4 = scmp.eq.s32.totalorder %s2525_s20, 0 }
  0x4b   : > { %s3065_s24 = smov (%p44_p6, %s43_s24), 0  ;;  %s3067_s10 = smov (!%p44_p6, %s50_s10), %s2521_s19 }
  0x4c   : > { %3038 = sst [smem:[#allocation27_spill]] %s3065_s24  ;;  %p72_p7 = scmp.ne.s32.totalorder %s2501_s14, %s2497_s13 }
  0x4d   : > { %2118 = dma.hbm_to_vmem [thread:$0]  (!%p2660_p5), %s3037_s5, 512, %s371_s26, [#allocation16], %s2530_s11, %s2530_s11, %s2531_s12  }
  0x4e   : > { %p52_p8 = scmp.ge.s32.totalorder %s3067_s10, 2  ;;  %p306_p9 = scmp.eq.s32.totalorder %s2647_s21, 5 }
  0x4f   : > { %p2723_p10 = por %p67_p4, %p66_p2  ;;  %p2729_p5 = por %p3022_p1, %p72_p7 }
  0x50   : > { %s3069_s10 = smov (%p52_p8, %s3067_s10), 0  ;;  %p2735_p11 = por %p306_p9, %p66_p2 }
  0x51   : > { %3041 = sst [smem:[#allocation28_spill]] %s3069_s10  ;;  %p312_p12 = scmp.eq.s32.totalorder %s1903_s25, 5 }
  0x52   : > { %s54_s26 = ssub.s32 %s2521_s19, %s3069_s10  ;;  %p2134_p13 = scmp.lt.s32.totalorder %s2525_s20, 6 }
  0x53   : > { %p57_p0 = scmp.eq.s32.totalorder %s54_s26, 0  ;;  %p2742_p6 = por %p312_p12, %p72_p7 }
  0x54   : > { %s396_s29 = sand.u32 1, %s2505_s15   ;;  %s1921_s30 = sshll.u32 %s2521_s19, 7 }
  0x55   : > { %s2749_s2 = scalar_select %p57_p0, %s2505_s15, %s59_s23  }
  0x56   : > { %s1920_s3 = sshll.u32 %s396_s29, 3  ;;  %s3044_s0 = sld [smem:[#allocation29_spill]] }
  0x57   : > { %s400_s18 = scalar_lea.vmem [#allocation6], %s1920_s3  ;;  %p2756_p2 = pnand %p2134_p13, %p2723_p10 }
  0x58   : > { %s408_s13 = sshll.u32 %s400_s18, 4  ;;  %s2763_s23 = scalar_lea.hbm %s3007_s1, %s1921_s30  ;;  %s409_s13 = int_to_ptr.vmem [resolvable:$true] %s408_s13 }
  0x59   : > { %s397_s19 = scalar_lea.sflag [#allocation7], %s396_s29  ;;  %p2359_p4 = pneg %p2756_p2 }
  0x5a   : > { %s2370_s4 = scalar_lea.vmem %s409_s13, 128  ;;  %s2533_s5 = smov [#allocation6]  }
  0x5b   : > { %p2371_p7 = scmp.ne.s32.totalorder %s409_s13, %s2370_s4  ;;  %s2375_s18 = sshll.u32 %s2533_s5, 4  ;;  %s2376_s18 = int_to_ptr.vmem [resolvable:$false] %s2375_s18 }
  0x5c   : > { %s406_s24 = scalar_lea.hbm %s3044_s0, %s1921_s30  ;;  %s2377_s11 = scalar_lea.vmem %s2376_s18, 256 }
  0x5d   : > { %p2373_p8 = pnand %p2371_p7, %p2359_p4  ;;  %p2378_p10 = scmp.lt.s32.totalorder %s409_s13, %s2376_s18 }
  0x5e   : > { %p2379_p12 = scmp.lt.s32.totalorder %s2377_s11, %s2370_s4 }
  0x5f   : > { %p2374_p9 = pneg %p2373_p8 }
  0x60   : > { %p2380_p13 = por %p2379_p12, %p2378_p10 }
  0x62   : > { %p2381_p0 = pnand %p2380_p13, %p2374_p9 }
  0x64   : > { %2384 = shalt.err (!%p2381_p0)
}
  0x65   : > { %2122 = dma.hbm_to_vmem [thread:$0]  (!%p2756_p2), %s406_s24, 128, %s409_s13, %s397_s19  }
  0x66   : > { %s415_s10 = sand.u32 1, %s2525_s20   ;;  %s419_s29 = scalar_lea.vmem [#allocation9], %s1920_s3 }
  0x67   : > { %s433_s30 = sshll.u32 %s419_s29, 4  ;;  %s416_s26 = scalar_lea.sflag [#allocation10], %s415_s10  ;;  %s434_s30 = int_to_ptr.vmem [resolvable:$true] %s433_s30 }
  0x68   : > { %s2398_s0 = scalar_lea.vmem %s434_s30, 128  ;;  %s2534_s4 = smov [#allocation9]  }
  0x69   : > { %p2399_p7 = scmp.ne.s32.totalorder %s434_s30, %s2398_s0  ;;  %s2403_s5 = sshll.u32 %s2534_s4, 4  ;;  %s2404_s5 = int_to_ptr.vmem [resolvable:$false] %s2403_s5 }
  0x6a   : > { %s2405_s18 = scalar_lea.vmem %s2404_s5, 256  ;;  %p2406_p9 = scmp.lt.s32.totalorder %s434_s30, %s2404_s5 }
  0x6b   : > { %p2401_p8 = pnand %p2399_p7, %p2359_p4  ;;  %p2407_p10 = scmp.lt.s32.totalorder %s2405_s18, %s2398_s0 }
  0x6d   : > { %p2402_p1 = pneg %p2401_p8  ;;  %p2408_p12 = por %p2407_p10, %p2406_p9 }
  0x6f   : > { %p2409_p13 = pnand %p2408_p12, %p2402_p1 }
  0x71   : > { %2412 = shalt.err (!%p2409_p13)
}
  0x72   : > { %2125 = dma.hbm_to_vmem [thread:$0]  (!%p2756_p2), %s2763_s23, 128, %s434_s30, %s416_s26  }
  0x73   : > { %442 = sbr.rel (%p2652_p3) target bundleno = 1936 (0x790), region = 60  ;;  %s2782_s3 = sand.u32 (!%p2652_p3), 1, %s2501_s14  }
  0x74   : > { %s2785_s13 = sshll.u32 (!%p2652_p3), %s2782_s3, 3  ;;  %s445_s0 = scalar_lea.sflag (!%p2652_p3), [#allocation7], %s2782_s3 }
  0x75   : > { %s448_s19 = scalar_lea.vmem (!%p2652_p3), [#allocation6], %s2785_s13 }
  0x78   : > { %2472 = dma.done.wait (%p2729_p5), %s445_s0, 128  }
  0x79   : > { %2474 = vsyncadd (%p2729_p5), %s445_s0, 4294967168  ;;  %s453_s22 = sand.u32 1, %s2647_s21   ;;  %s457_s25 = scalar_lea.vmem [#allocation9], %s2785_s13 }
  0x7a   : > { %s454_s24 = scalar_lea.sflag [#allocation10], %s453_s22 }
  0x7b   : > { %2476 = dma.done.wait (%p2729_p5), %s454_s24, 128  }
  0x7c   : > { %2478 = vsyncadd (%p2729_p5), %s454_s24, 4294967168  ;;  %p3046_p1 = scmp.eq.s32.totalorder %s2647_s21, 0 }
  0x7e   : > { %2480 = dma.done.wait (%p3046_p1), [#allocation10], 512   ;;  %p3047_p3 = pmov %p3046_p1 }
  0x7f   : > { %p3048_p2 = pmov %p3046_p1 }
  0x80   : > { %2482 = vsyncadd (%p3047_p3), [#allocation10], 4294966784 }
  0x81   : > { %2484 = dma.done.wait (%p3048_p2), [#allocation13], 1024   ;;  %p3049_p4 = pmov %p3046_p1 }
  0x82   : > { %p3050_p0 = pmov %p3046_p1 }
  0x83   : > { %2486 = vsyncadd (%p3049_p4), [#allocation13], 4294966272 }
  0x84   : > { %2488 = dma.done.wait (%p3050_p0), [#allocation16], 512   ;;  %p3051_p7 = pmov %p3050_p0 }
  0x85   : > { %s2812_s12 = sadd.s32 4294967295, %s2509_s16  ;;  %s514_s11 = scalar_lea.vmem [#allocation17], %s2785_s13 }
  0x86   : > { %2490 = vsyncadd (%p3051_p7), [#allocation16], 4294966784  ;;  %p523_p5 = scmp.ge.s32.totalorder %s2812_s12, 0  ;;  %p524_p8 = scmp.lt.s32.totalorder %s2812_s12, 1 }
  0x87   : > { %p1937_p10 = scmp.ne.s32.totalorder %s2509_s16, 0 }
  0x88   : > { %p2816_p9 = pnand %p524_p8, %p523_p5 }
  0x89   : > { %530 = sbr.rel (%p1937_p10) target bundleno = 347 (0x15b), region = 88 }
  0x8e   : > { %vm619_vm0 = vcmask 7168   ;;  %v535_v0 = vld [vmem:[#allocation11 + $0x18] sm:$0xff]  ;;  %v2535_v1 = vmov 0.0   ;;  %v2536_v2 = vmov -1e+30   ;;  %v534_v3 = vld [vmem:[#allocation11 + $0x10] sm:$0xff] }
  0x8f   : > { %2000 = vmatprep.subr.mxu0 %v2535_v1  ;;  %620 = vst.msk [vmem:[#allocation4] sm:$0xff] %vm619_vm0, %v2536_v2  ;;  %621 = vst.msk [vmem:[#allocation4 + $0x8] sm:$0xff] %vm619_vm0, %v2536_v2  ;;  %vm543_vm1 = vcmask 261120   ;;  %vm2537_vm2 = vmmov 0   ;;  %v533_v4 = vld [vmem:[#allocation11 + $0x8] sm:$0xff]  ;;  %v532_v5 = vld [vmem:[#allocation11] sm:$0xff] }
  0x90   : > { %622 = vst.msk [vmem:[#allocation4 + $0x10] sm:$0xff] %vm619_vm0, %v2536_v2  ;;  %623 = vst.msk [vmem:[#allocation4 + $0x18] sm:$0xff] %vm619_vm0, %v2536_v2  ;;  %2001 = vmatpush3.msra.mxu0 %v535_v0  ;;  %2008 = vmatprep.mubr.msk.f32.mxu0 %vm2537_vm2, %v2535_v1  ;;  %v531_v6 = vld [vmem:[%s448_s19] sm:$0xff]  ;;  %v1938_v7 = vld [vmem:[%s3012_s6] ss:$0 sm:$0xff] }
  0x91   : > { %624 = vst.msk [vmem:[#allocation5] sm:$0xff] %vm619_vm0, %v2535_v1  ;;  %625 = vst.msk [vmem:[#allocation5 + $0x8] sm:$0xff] %vm619_vm0, %v2535_v1  ;;  %2002 = vmatprep.subr.mxu0 %v2535_v1 }
  0x92   : > { %626 = vst.msk [vmem:[#allocation5 + $0x10] sm:$0xff] %vm619_vm0, %v2535_v1  ;;  %627 = vst.msk [vmem:[#allocation5 + $0x18] sm:$0xff] %vm619_vm0, %v2535_v1  ;;  %2003 = vmatpush3.msra.mxu0 %v534_v3 }
  0x93   : > { %618 = vst.msk [vmem:[#allocation3] sm:$0xff] %vm543_vm1, %v2535_v1  ;;  %2004 = vmatprep.subr.mxu0 %v2535_v1 }
  0x94   : > { %2005 = vmatpush3.msra.mxu0 %v533_v4 }
  0x95   : > { %2006 = vmatprep.subr.mxu0 %v2535_v1 }
  0x96   : > { %2007 = vmatpush3.msra.mxu0 %v532_v5 }
  0x97   : > { %2009 = vmatmul.mubr.msk.f32.vlgmr.msra.gmra.mxu0 %vm543_vm1, %v531_v6 }
 0x157   : > { %v613_v8 = vpop.f32.mrf.mxu0 }
 0x158   : > { %v614_v9 = vadd.f32 %v1938_v7, %v613_v8 }
 0x159   : > { %v2010_v10 = vpop.f32.mrf.mxu0 }
 0x15a   : > { %617 = vst.msk [vmem:[#allocation2] sm:$0xff] %vm543_vm1, %v614_v9 }
 0x15b PF: > { %629 = sbr.rel (%p2816_p9) target bundleno = 1525 (0x5f5), region = 92  ;;  %s2540_s26 = smov (!%p2816_p9), 112  }
 0x15c   : > { %s2541_s4 = smov (!%p2816_p9), 120   ;;  %s2542_s5 = smov (!%p2816_p9), 104  }
 0x15d   : > { %s1944_s18 = sshll.u32 (!%p2816_p9), %s2812_s12, 3  ;;  %s2544_s22 = smov (!%p2816_p9), 8  }
 0x15e   : > { %s2545_s24 = smov (!%p2816_p9), 16  }
 0x160   : > { %v634_v11 = vld [vmem:[#allocation12 + $0x18] sm:$0xff]  ;;  %v2538_v12 = vmov 0.0   ;;  %v633_v13 = vld [vmem:[#allocation12 + $0x10] sm:$0xff]  ;;  %vm2539_vm3 = vmmov 0   ;;  %v632_v14 = vld [vmem:[#allocation12 + $0x8] sm:$0xff]  ;;  %vm642_vm4 = vcmask 261120   ;;  %v797_v32 = vlaneseq }
 0x161   : > { %2011 = vmatprep.subr.mxu0 %v2538_v12  ;;  %2019 = vmatprep.mubr.msk.f32.mxu0 %vm2539_vm3, %v2538_v12  ;;  %v631_v15 = vld [vmem:[#allocation12] sm:$0xff]  ;;  %v630_v16 = vld [vmem:[%s457_s25] sm:$0xff]  ;;  %vm812_vm5 = vcmask 64512   ;;  %v717_v24 = vld [vmem:[#allocation14 + $0x8] sm:$0xff]  ;;  %v805_v34 = vstv %s1944_s18  ;;  %v2543_v43 = vmov 0   ;;  %vm912_vm9 = vcmask 7168  }
 0x162   : > { %2012 = vmatpush3.msra.mxu0 %v634_v11  ;;  %2022 = vmatprep.subr.mxu1 %v2538_v12  ;;  %v1940_v17 = vld [vmem:[%s3013_s7] ss:$0 sm:$0xff]  ;;  %v719_v22 = vld [vmem:[#allocation14 + $0x18] sm:$0xff]  ;;  %v716_v25 = vld [vmem:[#allocation14] sm:$0xff]  ;;  %v803_v33 = vand.u32 127, %v797_v32  ;;  %v798_v35 = vshrl.u32 %v797_v32, 7 }
 0x163   : > { %2013 = vmatprep.subr.mxu0 %v2538_v12  ;;  %2030 = vmatprep.mubr.msk.f32.mxu1 %vm2539_vm3, %v2538_v12  ;;  %v811_v21 = vld [vmem:[#allocation2] sm:$0xff]  ;;  %v890_v59 = vld [vmem:[#allocation4] sm:$0xff]  ;;  %v1079_v1 = vld [vmem:[#allocation4 + $0x8] sm:$0xff]  ;;  %s2546_s25 = smov 24   ;;  %vm1192_vm10 = vcmask 130112   ;;  %vm1389_vm11 = vcmask 195712  }
 0x164   : > { %2014 = vmatpush3.msra.mxu0 %v633_v13  ;;  %v718_v23 = vld [vmem:[#allocation14 + $0x10] sm:$0xff]  ;;  %2023 = vmatpush3.msra.mxu1 %v719_v22  ;;  %v806_v36 = vadd.s32 %v805_v34, %v803_v33  ;;  %v1474_v9 = vld [vmem:[#allocation4 + $0x18] sm:$0xff]  ;;  %vm1586_vm12 = vcmask 261312  }
 0x165   : > { %2015 = vmatprep.subr.mxu0 %v2538_v12  ;;  %2024 = vmatprep.subr.mxu1 %v2538_v12  ;;  %v1942_v56 = vld [vmem:[%s3014_s8] ss:$0 sm:$0xff] }
 0x166   : > { %2016 = vmatpush3.msra.mxu0 %v632_v14  ;;  %2025 = vmatpush3.msra.mxu1 %v718_v23  ;;  %v807_v37 = vsub.s32 %v806_v36, %v798_v35  ;;  %v1277_v4 = vld [vmem:[#allocation4 + $0x10] sm:$0xff] }
 0x167   : > { %2017 = vmatprep.subr.mxu0 %v2538_v12  ;;  %2026 = vmatprep.subr.mxu1 %v2538_v12 }
 0x168   : > { %2018 = vmatpush3.msra.mxu0 %v631_v15  ;;  %2027 = vmatpush3.msra.mxu1 %v717_v24  ;;  %vm808_vm6 = vcmp.ge.s32.totalorder %v807_v37, 4294967294  ;;  %vm809_vm7 = vcmp.le.s32.totalorder %v807_v37, 2 }
 0x169   : > { %2020 = vmatmul.mubr.msk.f32.vlgmr.msra.gmra.mxu0 %vm642_vm4, %v630_v16  ;;  %2033 = vmatprep.subr.mxu0 %v2538_v12  ;;  %vm2881_vm8 = vmand %vm808_vm6, %vm809_vm7 }
 0x16a   : > { %2035 = vmatprep.mubr.msk.f32.mxu0 %vm2539_vm3, %v2538_v12  ;;  %2028 = vmatprep.subr.mxu1 %v2538_v12 }
 0x16b   : > { %2029 = vmatpush3.msra.mxu1 %v716_v25  ;;  %2225 = vset.pattern.permute.xlu1 %v2543_v43 }
 0x16c   : > { %2031 = vmatmul.mubr.msk.f32.vlgmr.msra.gmra.mxu1 %vm642_vm4, %v630_v16  ;;  %2038 = vmatprep.subr.mxu1 %v2538_v12 }
 0x16d   : > { %2040 = vmatprep.mubr.msk.f32.mxu1 %vm2539_vm3, %v2538_v12  ;;  %2226 = vset.pattern.permute.xlu0 %v2543_v43 }
 0x229   : > { %v712_v18 = vpop.f32.mrf.mxu0 }
 0x22a   : > { %v713_v19 = vadd.f32 %v1940_v17, %v712_v18 }
 0x22b   : > { %v2021_v20 = vpop.f32.mrf.mxu0 }
 0x22c   : > { %1199 = vrot.lane.b32.xlu1 %v713_v19, %s2540_s26  ;;  %1001 = vrot.lane.b32.xlu0 %v713_v19, %s2541_s4  ;;  %v793_v57 = vpop.f32.mrf.mxu1 }
 0x22d   : > { %2034 = vmatpush3.xpose.msk.msra.mxu0 %vm812_vm5, %v713_v19  ;;  %v794_v58 = vadd.f32 %v1942_v56, %v793_v57  ;;  %v1294_v57 = vld [vmem:[#allocation5 + $0x10] sm:$0xff] }
 0x22e   : > { %2043 = vmatprep.subr.mxu0 %v2538_v12  ;;  %v2032_v60 = vpop.f32.mrf.mxu1 }
 0x22f   : > { %2039 = vmatpush3.msra.mxu1 %v794_v58 }
 0x230   : > { %2036 = vmatmul.mubr.msk.f32.vlgmr.msra.gmra.mxu0 %vm812_vm5, %v811_v21  ;;  %999 = vrot.lane.b32.xlu0 %v811_v21, %s2541_s4 }
 0x231   : > { %1197 = vrot.lane.b32.xlu1 %v811_v21, %s2540_s26  ;;  %2045 = vmatprep.mubr.msk.f32.mxu0 %vm2539_vm3, %v2538_v12 }
 0x232   : > { %2048 = vmatprep.subr.mxu1 %v2538_v12 }
 0x234   : > { %1396 = vrot.lane.b32.xlu0 %v713_v19, %s2542_s5 }
 0x235   : > { %1394 = vrot.lane.b32.xlu1 %v811_v21, %s2542_s5 }
 0x29e   : > { %v1002_v26 = vpop.permute.xlu0 %1001  ;;  %v1200_v27 = vpop.permute.xlu1 %1199 }
 0x29f   : > { %2044 = vmatpush3.xpose.msk.msra.mxu0 %vm812_vm5, %v1002_v26 }
 0x2a0   : > { %2053 = vmatprep.subr.mxu0 %v2538_v12 }
 0x2a2   : > { %v1000_v28 = vpop.permute.xlu0 %999 }
 0x2a3   : > { %2046 = vmatmul.mubr.msk.f32.vlgmr.msra.gmra.mxu0 %vm812_vm5, %v1000_v28  ;;  %v1198_v29 = vpop.permute.xlu1 %1197 }
 0x2a4   : > { %2054 = vmatpush3.xpose.msk.msra.mxu0 %vm812_vm5, %v1200_v27  ;;  %2055 = vmatprep.mubr.msk.f32.mxu0 %vm2539_vm3, %v2538_v12 }
 0x2a5   : > { %2063 = vmatprep.subr.mxu0 %v2538_v12 }
 0x2a6   : > { %v1397_v30 = vpop.permute.xlu0 %1396 }
 0x2a7   : > { %2056 = vmatmul.mubr.msk.f32.vlgmr.msra.gmra.mxu0 %vm812_vm5, %v1198_v29  ;;  %v1395_v31 = vpop.permute.xlu1 %1394 }
 0x2a8   : > { %2064 = vmatpush3.xpose.msk.msra.mxu0 %vm812_vm5, %v1397_v30  ;;  %2065 = vmatprep.mubr.msk.f32.mxu0 %vm2539_vm3, %v2538_v12 }
 0x2ab   : > { %2066 = vmatmul.mubr.msk.f32.vlgmr.msra.gmra.mxu0 %vm812_vm5, %v1395_v31 }
 0x2f0   : > { %v885_v39 = vpop.f32.mrf.mxu0 }
 0x2f1   : > { %v2887_v40 = vsel %vm2881_vm8, %v885_v39, -1e+30 }
 0x2f2   : > { %v891_v41 = vsel %vm812_vm5, %v2887_v40, -inf  ;;  %v2037_v42 = vpop.f32.mrf.mxu0 }
 0x2f3   : > { %892 = vmax.xlane.f32.xlu0 %v891_v41 }
 0x363   : > { %v1073_v44 = vpop.f32.mrf.mxu0 }
 0x364   : > { %v2893_v45 = vsel %vm2881_vm8, %v1073_v44, -1e+30  ;;  %v906_v44 = vld [vmem:[#allocation5] sm:$0xff] }
 0x365   : > { %v2047_v46 = vpop.f32.mrf.mxu0  ;;  %v1080_v47 = vsel %vm812_vm5, %v2893_v45, -inf }
 0x366   : > { %1081 = vmax.xlane.f32.xlu1 %v1080_v47 }
 0x367   : > { %v1271_v48 = vpop.f32.mrf.mxu0 }
 0x368   : > { %v2899_v49 = vsel %vm2881_vm8, %v1271_v48, -1e+30  ;;  %v914_v48 = vld [vmem:[#allocation3] sm:$0xff] }
 0x369   : > { %v2057_v50 = vpop.f32.mrf.mxu0  ;;  %v1278_v51 = vsel %vm812_vm5, %v2899_v49, -inf }
 0x36a   : > { %1279 = vmax.xlane.f32.xlu0 %v1278_v51 }
 0x36b   : > { %v1468_v52 = vpop.f32.mrf.mxu0 }
 0x36c   : > { %v2905_v53 = vsel %vm2881_vm8, %v1468_v52, -1e+30 }
 0x36d   : > { %v2067_v54 = vpop.f32.mrf.mxu0  ;;  %v1475_v55 = vsel %vm812_vm5, %v2905_v53, -inf }
 0x36e   : > { %1476 = vmax.xlane.f32.xlu0 %v1475_v55  ;;  %v1096_v54 = vld [vmem:[#allocation5 + $0x8] sm:$0xff] }
 0x37c   : > { %v893_v61 = vpop.xlane.xlu0 %892 }
 0x37d   : > { %v894_v62 = vmax.f32 %v890_v59, %v893_v61 }
 0x37f   : > { %v895_v63 = vsub.f32 %v890_v59, %v894_v62  ;;  %996 = vst.msk [vmem:[#allocation4] sm:$0xff] %vm912_vm9, %v894_v62  ;;  %900 = vperm.xlu1 %2225, %v894_v62  }
 0x381   : > { %v896_v0 = vmul.f32 1.442695, %v895_v63 }
 0x383   : > { %2227 = vpow2.f32 %v896_v0 }
 0x390   : > { %v2915_v5 = vpop.eup %2227 }
 0x3ef   : > { %v1082_v2 = vpop.xlane.xlu1 %1081 }
 0x3f0   : > { %v1083_v3 = vmax.f32 %v1079_v1, %v1082_v2 }
 0x3f2   : > { %1194 = vst.msk [vmem:[#allocation4 + $0x8] sm:$0xff] %vm912_vm9, %v1083_v3  ;;  %1089 = vperm.xlu0 %2226, %v1083_v3   ;;  %v1084_v7 = vsub.f32 %v1079_v1, %v1083_v3 }
 0x3f3   : > { %v1280_v6 = vpop.xlane.xlu0 %1279 }
 0x3f4   : > { %v1281_v8 = vmax.f32 %v1277_v4, %v1280_v6  ;;  %v1085_v13 = vmul.f32 1.442695, %v1084_v7 }
 0x3f6   : > { %v1282_v10 = vsub.f32 %v1277_v4, %v1281_v8  ;;  %1391 = vst.msk [vmem:[#allocation4 + $0x10] sm:$0xff] %vm912_vm9, %v1281_v8  ;;  %1287 = vperm.xlu1 %2225, %v1281_v8   ;;  %917 = vperm.xlu0 %2226, %v2915_v5  }
 0x3f7   : > { %v1477_v11 = vpop.xlane.xlu0 %1476 }
 0x3f8   : > { %v1283_v14 = vmul.f32 1.442695, %v1282_v10  ;;  %v1478_v15 = vmax.f32 %v1474_v9, %v1477_v11 }
 0x3fa   : > { %2229 = vpow2.f32 %v1283_v14  ;;  %v901_v16 = vpop.permute.xlu1 %900  ;;  %1111 = vrot.lane.b32.xlu1 %v794_v58, %s2541_s4  ;;  %v1479_v17 = vsub.f32 %v1474_v9, %v1478_v15  ;;  %1588 = vst.msk [vmem:[#allocation4 + $0x18] sm:$0xff] %vm912_vm9, %v1478_v15  ;;  %v1491_v14 = vld [vmem:[#allocation5 + $0x18] sm:$0xff] }
 0x3fb   : > { %v903_v18 = vsub.f32 %v2887_v40, %v901_v16  ;;  %2231 = vpow2.f32 %v1085_v13 }
 0x3fc   : > { %v1480_v38 = vmul.f32 1.442695, %v1479_v17 }
 0x3fd   : > { %v904_v19 = vmul.f32 1.442695, %v903_v18 }
 0x3fe   : > { %1484 = vperm.xlu1 %2225, %v1478_v15  }
 0x3ff   : > { %2233 = vpow2.f32 %v904_v19 }
 0x402   : > { %1308 = vrot.lane.b32.xlu1 %v794_v58, %s2540_s26 }
 0x406   : > { %1505 = vrot.lane.b32.xlu1 %v794_v58, %s2542_s5 }
 0x407   : > { %v2924_v20 = vpop.eup %2229 }
 0x408   : > { %1304 = vperm.xlu0 %2226, %v2924_v20   ;;  %v2232_v21 = vpop.eup %2231  ;;  %v1295_v59 = vmul.f32 %v2924_v20, %v1294_v57 }
 0x409   : > { %v1097_v55 = vmul.f32 %v2232_v21, %v1096_v54 }
 0x40a   : > { %1106 = vperm.xlu1 %2225, %v2232_v21  }
 0x40c   : > { %v2234_v22 = vpop.eup %2233 }
 0x40d   : > { %2041 = vmatmul.mubr.msk.f32.vlgmr.msra.gmra.mxu1 %vm812_vm5, %v2234_v22  ;;  %v908_v23 = vsel %vm812_vm5, %v2234_v22, 0.0 }
 0x40e   : > { %2050 = vmatprep.mubr.msk.f32.mxu1 %vm2539_vm3, %v2538_v12 }
 0x42e   : > { %909 = vadd.xlane.f32.xlu1 %v908_v23 }
 0x46d   : > { %v1090_v24 = vpop.permute.xlu0 %1089 }
 0x46e   : > { %v1092_v25 = vsub.f32 %v2893_v45, %v1090_v24  ;;  %v907_v45 = vmul.f32 %v2915_v5, %v906_v44 }
 0x470   : > { %v1093_v26 = vmul.f32 1.442695, %v1092_v25 }
 0x471   : > { %v1288_v27 = vpop.permute.xlu1 %1287 }
 0x472   : > { %2235 = vpow2.f32 %v1093_v26  ;;  %v1290_v28 = vsub.f32 %v2899_v49, %v1288_v27  ;;  %v918_v49 = vpop.permute.xlu0 %917 }
 0x473   : > { %v920_v50 = vmul.f32 %v918_v49, %v914_v48 }
 0x474   : > { %v1291_v29 = vmul.f32 1.442695, %v1290_v28 }
 0x475   : > { %v1112_v30 = vpop.permute.xlu1 %1111 }
 0x476   : > { %2237 = vpow2.f32 %v1291_v29  ;;  %2049 = vmatpush3.msra.mxu1 %v1112_v30 }
 0x477   : > { %2058 = vmatprep.subr.mxu1 %v2538_v12 }
 0x479   : > { %v1485_v31 = vpop.permute.xlu1 %1484 }
 0x47a   : > { %v1487_v32 = vsub.f32 %v2905_v53, %v1485_v31 }
 0x47c   : > { %v1488_v33 = vmul.f32 1.442695, %v1487_v32 }
 0x47d   : > { %v1309_v34 = vpop.permute.xlu1 %1308 }
 0x47e   : > { %2239 = vpow2.f32 %v1488_v33 }
 0x47f   : > { %v2236_v35 = vpop.eup %2235  ;;  %2241 = vpow2.f32 %v1480_v38 }
 0x480   : > { %2051 = vmatmul.mubr.msk.f32.vlgmr.msra.gmra.mxu1 %vm812_vm5, %v2236_v35  ;;  %v1098_v36 = vsel %vm812_vm5, %v2236_v35, 0.0 }
 0x481   : > { %2059 = vmatpush3.msra.mxu1 %v1309_v34  ;;  %1099 = vadd.xlane.f32.xlu0 %v1098_v36  ;;  %v1506_v39 = vpop.permute.xlu1 %1505 }
 0x482   : > { %2060 = vmatprep.mubr.msk.f32.mxu1 %vm2539_vm3, %v2538_v12  ;;  %2068 = vmatprep.subr.mxu1 %v2538_v12 }
 0x483   : > { %v2238_v37 = vpop.eup %2237  ;;  %v1305_v53 = vpop.permute.xlu0 %1304 }
 0x484   : > { %2061 = vmatmul.mubr.msk.f32.vlgmr.msra.gmra.mxu1 %vm812_vm5, %v2238_v37  ;;  %v1296_v40 = vsel %vm812_vm5, %v2238_v37, 0.0 }
 0x485   : > { %2069 = vmatpush3.msra.mxu1 %v1506_v39  ;;  %1297 = vadd.xlane.f32.xlu1 %v1296_v40  ;;  %v1107_v43 = vpop.permute.xlu1 %1106 }
 0x486   : > { %2070 = vmatprep.mubr.msk.f32.mxu1 %vm2539_vm3, %v2538_v12 }
 0x48b   : > { %v2240_v41 = vpop.eup %2239 }
 0x48c   : > { %2071 = vmatmul.mubr.msk.f32.vlgmr.msra.gmra.mxu1 %vm812_vm5, %v2240_v41  ;;  %v2242_v42 = vpop.eup %2241  ;;  %v1493_v4 = vsel %vm812_vm5, %v2240_v41, 0.0 }
 0x48d   : > { %v1492_v15 = vmul.f32 %v2242_v42, %v1491_v14 }
 0x496   : > { %1501 = vperm.xlu1 %2225, %v2242_v42  }
 0x4b7   : > { %v910_v46 = vpop.xlane.xlu1 %909 }
 0x4b8   : > { %v911_v47 = vadd.f32 %v910_v46, %v907_v45 }
 0x4ba   : > { %913 = vst.msk [vmem:[#allocation5] sm:$0xff] %vm912_vm9, %v911_v47 }
 0x4cd   : > { %v990_v51 = vpop.f32.mrf.mxu1 }
 0x4ce   : > { %v994_v52 = vadd.f32 %v990_v51, %v920_v50 }
 0x4cf   : > { %v2042_v12 = vpop.f32.mrf.mxu1 }
 0x4d0   : > { %995 = vst.msk [vmem:[#allocation3] sm:$0xff] %vm812_vm5, %v994_v52 }
 0x4d7   : > { %v1103_v5 = vld [vmem:[#allocation3] sm:$0xff] }
 0x4d8   : > { %v1109_v6 = vmul.f32 %v1107_v43, %v1103_v5 }
 0x50a   : > { %v1100_v56 = vpop.xlane.xlu0 %1099 }
 0x50b   : > { %v1101_v58 = vadd.f32 %v1100_v56, %v1097_v55 }
 0x50d   : > { %1102 = vst.msk [vmem:[#allocation5 + $0x8] sm:$0xff] %vm912_vm9, %v1101_v58 }
 0x50e   : > { %v1298_v60 = vpop.xlane.xlu1 %1297 }
 0x50f   : > { %v1299_v61 = vadd.f32 %v1298_v60, %v1295_v59 }
 0x511   : > { %1300 = vst.msk [vmem:[#allocation5 + $0x10] sm:$0xff] %vm912_vm9, %v1299_v61 }
 0x512   : > { %v1502_v19 = vpop.permute.xlu1 %1501 }
 0x540   : > { %v1183_v62 = vpop.f32.mrf.mxu1 }
 0x541   : > { %1188 = vrot.lane.b32.xlu0 %v1183_v62, %s2544_s22 }
 0x542   : > { %v2052_v63 = vpop.f32.mrf.mxu1 }
 0x544   : > { %v1380_v0 = vpop.f32.mrf.mxu1 }
 0x545   : > { %1385 = vrot.lane.b32.xlu0 %v1380_v0, %s2545_s24 }
 0x546   : > { %v2062_v1 = vpop.f32.mrf.mxu1 }
 0x54c   : > { %v1577_v2 = vpop.f32.mrf.mxu1 }
 0x54e   : > { %v2072_v3 = vpop.f32.mrf.mxu1 }
 0x564   : > { %1494 = vadd.xlane.f32.xlu0 %v1493_v4 }
 0x57a   : > { %1582 = vrot.lane.b32.xlu0 %v1577_v2, %s2546_s25 }
 0x5b3   : > { %v1189_v7 = vpop.permute.xlu0 %1188 }
 0x5b4   : > { %v1191_v8 = vadd.f32 %v1189_v7, %v1109_v6 }
 0x5b6   : > { %1193 = vst.msk [vmem:[#allocation3] sm:$0xff] %vm1192_vm10, %v1191_v8 }
 0x5b7   : > { %v1386_v11 = vpop.permute.xlu0 %1385 }
 0x5bd   : > { %v1301_v9 = vld [vmem:[#allocation3] sm:$0xff] }
 0x5be   : > { %v1307_v10 = vmul.f32 %v1305_v53, %v1301_v9 }
 0x5c0   : > { %v1388_v13 = vadd.f32 %v1386_v11, %v1307_v10 }
 0x5c2   : > { %1390 = vst.msk [vmem:[#allocation3] sm:$0xff] %vm1389_vm11, %v1388_v13 }
 0x5c9   : > { %v1498_v17 = vld [vmem:[#allocation3] sm:$0xff] }
 0x5ca   : > { %v1504_v20 = vmul.f32 %v1502_v19, %v1498_v17 }
 0x5ed   : > { %v1495_v16 = vpop.xlane.xlu0 %1494 }
 0x5ee   : > { %v1496_v18 = vadd.f32 %v1495_v16, %v1492_v15 }
 0x5f0   : > { %1497 = vst.msk [vmem:[#allocation5 + $0x18] sm:$0xff] %vm912_vm9, %v1496_v18 }
 0x5f1   : > { %v1583_v21 = vpop.permute.xlu0 %1582 }
 0x5f2   : > { %v1585_v22 = vadd.f32 %v1583_v21, %v1504_v20 }
 0x5f4   : > { %1587 = vst.msk [vmem:[#allocation3] sm:$0xff] %vm1586_vm12, %v1585_v22 }
 0x5f5 PF: > { %p1957_p12 = scmp.ne.s32.totalorder %s2509_s16, 2 }
 0x5f7   : > { %1592 = sbr.rel (%p1957_p12) target bundleno = 1913 (0x779), region = 96 }
 0x5fc   : > { %v1593_v23 = vld [vmem:[#allocation5] sm:$0xff]  ;;  %v1608_v24 = vld [vmem:[#allocation5 + $0x8] sm:$0xff]  ;;  %v1623_v25 = vld [vmem:[#allocation5 + $0x10] sm:$0xff]  ;;  %v2547_v26 = vmov 0   ;;  %v2548_v44 = vmov 0.0   ;;  %vm2549_vm13 = vmmov 0  }
 0x5fd   : > { %2243 = vset.pattern.permute.xlu0 %v2547_v26  ;;  %2245 = vrcp.f32 %v1593_v23  ;;  %2244 = vset.pattern.permute.xlu1 %v2547_v26  ;;  %v1638_v27 = vld [vmem:[#allocation5 + $0x18] sm:$0xff]  ;;  %v1655_v46 = vld [vmem:[#allocation15 + $0x10] sm:$0xff]  ;;  %v1654_v47 = vld [vmem:[#allocation15 + $0x8] sm:$0xff]  ;;  %vm1605_vm14 = vcmask 64512   ;;  %vm1620_vm15 = vcmask 130112   ;;  %vm1635_vm0 = vcmask 195712  }
 0x5fe   : > { %2247 = vrcp.f32 %v1608_v24  ;;  %2073 = vmatprep.subr.mxu0 %v2548_v44  ;;  %v1656_v45 = vld [vmem:[#allocation15 + $0x18] sm:$0xff]  ;;  %2081 = vmatprep.mubr.msk.f32.mxu0 %vm2549_vm13, %v2548_v44  ;;  %v1653_v48 = vld [vmem:[#allocation15] sm:$0xff]  ;;  %vm1650_vm1 = vcmask 261312   ;;  %vm1664_vm2 = vcmask 261120   ;;  %v1958_v61 = vld [vmem:[%s3015_s9] ss:$0 sm:$0xff] }
 0x5ff   : > { %2249 = vrcp.f32 %v1623_v25  ;;  %2074 = vmatpush3.msra.mxu0 %v1656_v45  ;;  %v1598_v49 = vld [vmem:[#allocation3] sm:$0xff] }
 0x600   : > { %2251 = vrcp.f32 %v1638_v27  ;;  %2075 = vmatprep.subr.mxu0 %v2548_v44 }
 0x601   : > { %2076 = vmatpush3.msra.mxu0 %v1655_v46 }
 0x602   : > { %2077 = vmatprep.subr.mxu0 %v2548_v44 }
 0x603   : > { %2078 = vmatpush3.msra.mxu0 %v1654_v47 }
 0x604   : > { %2079 = vmatprep.subr.mxu0 %v2548_v44 }
 0x605   : > { %2080 = vmatpush3.msra.mxu0 %v1653_v48 }
 0x60a   : > { %v2246_v28 = vpop.eup %2245 }
 0x60b   : > { %v2248_v29 = vpop.eup %2247  ;;  %v1595_v30 = vmul.f32 %v2246_v28, %v1593_v23 }
 0x60c   : > { %v2250_v31 = vpop.eup %2249  ;;  %v1610_v32 = vmul.f32 %v2248_v29, %v1608_v24 }
 0x60d   : > { %v2252_v33 = vpop.eup %2251  ;;  %v1596_v34 = vsub.f32 2.0, %v1595_v30  ;;  %v1625_v35 = vmul.f32 %v2250_v31, %v1623_v25 }
 0x60e   : > { %v1611_v36 = vsub.f32 2.0, %v1610_v32  ;;  %v1640_v37 = vmul.f32 %v2252_v33, %v1638_v27 }
 0x60f   : > { %v1597_v38 = vmul.f32 %v2246_v28, %v1596_v34  ;;  %v1626_v39 = vsub.f32 2.0, %v1625_v35 }
 0x610   : > { %v1641_v40 = vsub.f32 2.0, %v1640_v37  ;;  %v1612_v41 = vmul.f32 %v2248_v29, %v1611_v36 }
 0x611   : > { %1601 = vperm.xlu0 %2243, %v1597_v38   ;;  %v1627_v42 = vmul.f32 %v2250_v31, %v1626_v39 }
 0x612   : > { %v1642_v43 = vmul.f32 %v2252_v33, %v1641_v40 }
 0x613   : > { %1631 = vperm.xlu1 %2244, %v1627_v42  }
 0x615   : > { %1616 = vperm.xlu0 %2243, %v1612_v41  }
 0x617   : > { %1646 = vperm.xlu1 %2244, %v1642_v43  }
 0x68c   : > { %v1602_v50 = vpop.permute.xlu0 %1601 }
 0x68d   : > { %v1604_v51 = vmul.f32 %v1602_v50, %v1598_v49 }
 0x68e   : > { %v1632_v54 = vpop.permute.xlu1 %1631 }
 0x68f   : > { %1606 = vst.msk [vmem:[#allocation3] sm:$0xff] %vm1605_vm14, %v1604_v51 }
 0x690   : > { %v1617_v12 = vpop.permute.xlu0 %1616 }
 0x692   : > { %v1647_v57 = vpop.permute.xlu1 %1646 }
 0x696   : > { %v1613_v52 = vld [vmem:[#allocation3] sm:$0xff] }
 0x697   : > { %v1619_v53 = vmul.f32 %v1617_v12, %v1613_v52 }
 0x699   : > { %1621 = vst.msk [vmem:[#allocation3] sm:$0xff] %vm1620_vm15, %v1619_v53 }
 0x6a0   : > { %v1628_v55 = vld [vmem:[#allocation3] sm:$0xff] }
 0x6a1   : > { %v1634_v56 = vmul.f32 %v1632_v54, %v1628_v55 }
 0x6a3   : > { %1636 = vst.msk [vmem:[#allocation3] sm:$0xff] %vm1635_vm0, %v1634_v56 }
 0x6aa   : > { %v1643_v58 = vld [vmem:[#allocation3] sm:$0xff] }
 0x6ab   : > { %v1649_v59 = vmul.f32 %v1647_v57, %v1643_v58 }
 0x6ad   : > { %1651 = vst.msk [vmem:[#allocation3] sm:$0xff] %vm1650_vm1, %v1649_v59 }
 0x6b4   : > { %v1652_v60 = vld [vmem:[#allocation3] sm:$0xff] }
 0x6b5   : > { %2082 = vmatmul.mubr.msk.f32.vlgmr.msra.gmra.mxu0 %vm1664_vm2, %v1652_v60 }
 0x775   : > { %v1734_v62 = vpop.f32.mrf.mxu0 }
 0x776   : > { %v1735_v63 = vadd.f32 %v1958_v61, %v1734_v62 }
 0x777   : > { %v2083_v0 = vpop.f32.mrf.mxu0 }
 0x778   : > { %1738 = vst.msk [vmem:[%s514_s11] sm:$0xff] %vm1664_vm2, %v1735_v63 }
 0x779 PF: > { %s1961_s23 = sshll.u32 %s2513_s17, 7  ;;  %s3055_s29 = sld [smem:[#allocation34_spill]] }
 0x77a   : > { %s1754_s26 = sshll.u32 %s514_s11, 4  ;;  %s1740_s4 = scalar_lea.sflag [#allocation8], %s2782_s3  ;;  %s1755_s26 = int_to_ptr.vmem [resolvable:$true] %s1754_s26 }
 0x77b   : > { %s2413_s5 = scalar_lea.vmem %s1755_s26, 128  ;;  %s2550_s18 = smov [#allocation17]  }
 0x77c   : > { %p2414_p13 = scmp.ne.s32.totalorder %s1755_s26, %s2413_s5  ;;  %s2417_s0 = sshll.u32 %s2550_s18, 4  ;;  %s2418_s0 = int_to_ptr.vmem [resolvable:$false] %s2417_s0 }
 0x77d   : > { %s2419_s19 = scalar_lea.vmem %s2418_s0, 256  ;;  %p2420_p2 = scmp.lt.s32.totalorder %s1755_s26, %s2418_s0 }
 0x77e   : > { %p2415_p1 = pnand %p2414_p13, %p2735_p11  ;;  %p2421_p4 = scmp.lt.s32.totalorder %s2419_s19, %s2413_s5 }
 0x77f   : > { %s1752_s30 = scalar_lea.hbm %s3055_s29, %s1961_s23 }
 0x780   : > { %p2416_p3 = pneg %p2415_p1  ;;  %p2422_p0 = por %p2421_p4, %p2420_p2 }
 0x782   : > { %p2423_p7 = pnand %p2422_p0, %p2416_p3 }
 0x784   : > { %2426 = shalt.err (!%p2423_p7)
}
 0x785   : > { %s2427_s17 = scalar_lea.hbm %s1752_s30, 128  ;;  %s2431_s11 = scalar_lea.hbm %s3055_s29, 256 }
 0x786   : > { %p2428_p5 = scmp.ne.s32.totalorder %s1752_s30, %s2427_s17  ;;  %p2432_p10 = scmp.lt.s32.totalorder %s1752_s30, %s3055_s29 }
 0x787   : > { %p2433_p12 = scmp.lt.s32.totalorder %s2431_s11, %s2427_s17 }
 0x788   : > { %p2429_p8 = pnand %p2428_p5, %p2735_p11 }
 0x789   : > { %p2434_p13 = por %p2433_p12, %p2432_p10 }
 0x78a   : > { %p2430_p9 = pneg %p2429_p8 }
 0x78c   : > { %p2435_p1 = pnand %p2434_p13, %p2430_p9 }
 0x78e   : > { %2438 = shalt.err (!%p2435_p1)
}
 0x78f   : > { %2104 = dma.vmem_to_hbm [thread:$0]  (%p2735_p11), %s1755_s26, 128, %s1752_s30, %s1740_s4  }
 0x790 PF: > { %s3056_s25 = sld [smem:[#allocation24_spill]]  ;;  %p2139_p3 = scmp.ge.s32.totalorder %s2525_s20, 2 }
 0x792   : > { %p2127_p2 = pnand %p2139_p3, %p2742_p6 }
 0x794   : > { %p2128_p4 = pneg %p2127_p2 }
 0x796   : > { %s1766_s16 = sand.u32 1, %s3056_s25  }
 0x797   : > { %s1767_s12 = scalar_lea.sflag [#allocation8], %s1766_s16 }
 0x798   : > { %2492 = dma.done.wait (%p2128_p4), %s1767_s12, 128  }
 0x799   : > { %2494 = vsyncadd (%p2128_p4), %s1767_s12, 4294967168  ;;  %s31_s20 = sadd.s32 1, %s2525_s20   ;;  %s3057_s16 = sld [smem:[#allocation25_spill]] }
 0x79a   : > { %p28_p0 = scmp.ge.s32.totalorder %s31_s20, 8   ;;  %s3058_s17 = sld [smem:[#allocation26_spill]] }
 0x79b   : > { %s3059_s18 = sld [smem:[#allocation27_spill]]  ;;  %s3061_s13 = smov %s2501_s14 }
 0x79c   : > { %s3060_s19 = sld [smem:[#allocation28_spill]]  ;;  %s3062_s14 = smov %s2505_s15 }
 0x79d   : > { %s3063_s15 = smov %s2749_s2  ;;  %30 = sbr.rel (!%p28_p0) target bundleno = 18 (0x12), region = 155 }
 0x7a2   :  { %1772 = vsyncpa [#allocation7], 1 }
 0x7a3   :  { %1774 = vsyncpa [#allocation7 + $0x1], 1 }
 0x7a4   :  { %1775 = vsyncpa [#allocation10], 1 }
 0x7a5   :  { %1777 = vsyncpa [#allocation10 + $0x1], 1 }
 0x7a6   :  { %1778 = vsyncpa [#allocation13], 1 }
 0x7a7   :  { %1779 = vsyncpa [#allocation16], 1 }
 0x7a8   :  { %1780 = vsyncpa [#allocation8], 1 }
 0x7a9   :  { %1782 = vsyncpa [#allocation8 + $0x1], 1 }

</bundles_post_ra>
